<compile_context>
chip_gen: v7x
topology: tpu7x:2x2x1
jax: 0.10.0
libtpu: 0.0.40
codegen_flags: <defaults>
</compile_context>

<pallas_src>
import functools

import jax
import jax.numpy as jnp
from jax import lax
from jax.experimental import pallas as pl
from jax.experimental.pallas import tpu as pltpu


def _choose_tn(n, max_tn):
    """Output-feature tile width for one layer.

    - If N is not a multiple of 128 (e.g. code_len=64), take the whole layer
      as a single tile: a block dim equal to the full array dim is always
      legal (masked stores are fine for such a tiny layer).
    - Otherwise use the largest multiple of 128 that divides N, capped at
      max_tn (1024 by default: big enough that per-tile DMA dominates per-tile
      overhead, small enough to double-buffer inside v7x's 64 MiB VMEM).
    """
    if n % 128 != 0 or n <= max_tn:
        return n
    tn = max_tn - (max_tn % 128)
    while n % tn != 0:
        tn -= 128
    return tn


# ----------------------------------------------------------------------------
# Fused kernel: 4 x (Linear (bias dropped) + BatchNorm1d(train) + activation)
# ----------------------------------------------------------------------------
def _fused_txtnet_kernel(x_ref,
                         w1, w2, w3, w4,                 # HBM (pl.ANY)
                         g1, be1, g2, be2, g3, be3, g4, be4,  # (1, N) f32 VMEM
                         f1, f2, f3, f4,                 # f32 outputs
                         a1, a2, a3,                     # bf16 activation scratch
                         wb1, wb2, wb3, wb4,             # weight double-buffers
                         sem,                            # DMA sems (4, 2)
                         *, eps, batch, tns):
    inv_b = 1.0 / batch

    # (source act, weight HBM, weight buf, gamma, beta, out, next act, tn, act)
    cfgs = (
        (x_ref, w1, wb1, g1, be1, f1, a1,   tns[0], "relu"),
        (a1,    w2, wb2, g2, be2, f2, a2,   tns[1], "relu"),
        (a2,    w3, wb3, g3, be3, f3, a3,   tns[2], "relu"),
        (a3,    w4, wb4, g4, be4, f4, None, tns[3], "tanh"),
    )

    def wcopy(l, j, slot):
        w_hbm, wbuf, tn = cfgs[l][1], cfgs[l][2], cfgs[l][7]
        return pltpu.make_async_copy(
            w_hbm.at[:, j * tn:(j + 1) * tn], wbuf.at[slot], sem.at[l, slot])

    # Prime the very first weight tile; every later tile (including the next
    # layer's tile 0) is prefetched from inside the loop below.
    wcopy(0, 0, 0).start()

    for l, (src, w_hbm, wbuf, g_ref, b_ref, out_ref, act_ref, tn,
            act) in enumerate(cfgs):
        nt = w_hbm.shape[1] // tn       # static tile count for this layer
        nbuf = wbuf.shape[0]            # 1 or 2 buffers
        xv = src[...]                   # resident bf16 activation for layer l

        for j in range(nt):             # static, fully unrolled
            slot = j % nbuf
            wcopy(l, j, slot).wait()
            if j + 1 < nt:
                wcopy(l, j + 1, (j + 1) % nbuf).start()
            elif l + 1 < len(cfgs):
                # Cross-layer prefetch: overlap the next layer's first weight
                # DMA with this layer's last tile compute / epilogue.
                wcopy(l + 1, 0, 0).start()

            # MXU matmul: bf16 x bf16 -> f32 accumulation, full-K contraction.
            y = jnp.dot(xv, wbuf[slot], preferred_element_type=jnp.float32)

            # BatchNorm1d, training mode: batch stats, biased (1/B) variance.
            # Linear bias omitted: cancelled exactly by the mean subtraction.
            g_t = g_ref[:, j * tn:(j + 1) * tn]
            b_t = b_ref[:, j * tn:(j + 1) * tn]
            mean = jnp.sum(y, axis=0, keepdims=True) * inv_b
            c = y - mean
            var = jnp.sum(c * c, axis=0, keepdims=True) * inv_b
            z = c * lax.rsqrt(var + eps) * g_t + b_t
            z = jnp.maximum(z, 0.0) if act == "relu" else jnp.tanh(z)

            out_ref[:, j * tn:(j + 1) * tn] = z.astype(out_ref.dtype)
            if act_ref is not None:     # feed the next layer in bf16
                act_ref[:, j * tn:(j + 1) * tn] = z.astype(act_ref.dtype)


# ----------------------------------------------------------------------------
# Wrapper: one pallas_call for the whole forward pass
# ----------------------------------------------------------------------------
def txtnet_s_forward(x, params, *, eps=1e-5, max_tn=1024,
                     vmem_limit_bytes=56 * 1024 * 1024):
    B, K0 = x.shape
    ws = [params[f"w{i}"] for i in range(1, 5)]
    gs = [params[f"g{i}"].reshape(1, -1).astype(jnp.float32) for i in range(1, 5)]
    bs = [params[f"be{i}"].reshape(1, -1).astype(jnp.float32) for i in range(1, 5)]
    Ks = [w.shape[0] for w in ws]
    Ns = [w.shape[1] for w in ws]
    assert Ks[0] == K0 and Ks[1] == Ns[0] and Ks[2] == Ns[1] and Ks[3] == Ns[2]

    tns = tuple(_choose_tn(n, max_tn) for n in Ns)

    # Cast x to the weight dtype ONCE here (not per tile inside the kernel).
    x_in = x.astype(ws[0].dtype)

    kernel = functools.partial(_fused_txtnet_kernel, eps=eps, batch=float(B),
                               tns=tns)

    # Scratch: bf16 activations + per-layer weight (double-)buffers + DMA sems.
    scratch = [pltpu.VMEM((B, Ns[0]), jnp.bfloat16),
               pltpu.VMEM((B, Ns[1]), jnp.bfloat16),
               pltpu.VMEM((B, Ns[2]), jnp.bfloat16)]
    for w, tn in zip(ws, tns):
        k, n = w.shape
        nbuf = 2 if n // tn > 1 else 1
        scratch.append(pltpu.VMEM((nbuf, k, tn), w.dtype))
    scratch.append(pltpu.SemaphoreType.DMA((4, 2)))

    gb_args, gb_specs = [], []
    for g, b in zip(gs, bs):
        n = g.shape[1]
        gb_args += [g, b]
        gb_specs += [pl.BlockSpec((1, n), lambda i: (0, 0)),
                     pl.BlockSpec((1, n), lambda i: (0, 0))]

    outs = pl.pallas_call(
        kernel,
        out_shape=tuple(jax.ShapeDtypeStruct((B, n), jnp.float32) for n in Ns),
        grid_spec=pltpu.PrefetchScalarGridSpec(
            num_scalar_prefetch=0,
            grid=(1,),
            in_specs=[pl.BlockSpec((B, K0), lambda i: (0, 0))]   # x resident
                     + [pl.BlockSpec(memory_space=pl.ANY)] * 4   # weights: HBM
                     + gb_specs,                                 # gamma/beta
            out_specs=tuple(pl.BlockSpec((B, n), lambda i: (0, 0)) for n in Ns),
            scratch_shapes=scratch,
        ),
        compiler_params=pltpu.CompilerParams(
            dimension_semantics=("arbitrary",),
            vmem_limit_bytes=vmem_limit_bytes),
    )(x_in, *ws, *gb_args)

    feat1, feat2, feat3, code = outs
    return feat1, feat2, feat3, code


def init_params(key, text_length, d1, d2, d3, code_len):
    dims = [(text_length, d1), (d1, d2), (d2, d3), (d3, code_len)]
    params = {}
    for i, (fan_in, fan_out) in enumerate(dims, start=1):
        key, kw, kb, kg, ke = jax.random.split(key, 5)
        bound = 1.0 / (fan_in ** 0.5)
        # weight stored as [in, out] == PyTorch weight.T; streamed in bf16.
        params[f"w{i}"] = jax.random.uniform(
            kw, (fan_in, fan_out), jnp.float32, -bound, bound
        ).astype(jnp.bfloat16)
        # Bias is kept only for the reference (BN cancels it exactly); the
        # Pallas kernel does not consume it.
        params[f"b{i}"] = jax.random.uniform(
            kb, (fan_out,), jnp.float32, -bound, bound)
        # Non-trivial BN affine so the gamma/beta path is actually exercised.
        params[f"g{i}"] = jax.random.uniform(kg, (fan_out,), jnp.float32, 0.5, 1.5)
        params[f"be{i}"] = jax.random.uniform(ke, (fan_out,), jnp.float32, -0.5, 0.5)
    return params


# ----------------------------------------------------------------------------
# Pure-JAX reference (includes the Linear bias; training-mode BN cancels it)
# ----------------------------------------------------------------------------
def _ref_layer(x, w, b, g, beta, act, eps=1e-5):
    y = jnp.dot(x.astype(w.dtype), w, preferred_element_type=jnp.float32) + b
    mean = jnp.mean(y, axis=0, keepdims=True)
    var = jnp.mean((y - mean) ** 2, axis=0, keepdims=True)
    z = (y - mean) / jnp.sqrt(var + eps) * g + beta
    return jnp.maximum(z, 0.0) if act == "relu" else jnp.tanh(z)


def txtnet_s_ref(x, p):
    f1 = _ref_layer(x, p["w1"], p["b1"], p["g1"], p["be1"], "relu")
    f2 = _ref_layer(f1, p["w2"], p["b2"], p["g2"], p["be2"], "relu")
    f3 = _ref_layer(f2, p["w3"], p["b3"], p["g3"], p["be3"], "relu")
    c = _ref_layer(f3, p["w4"], p["b4"], p["g4"], p["be4"], "tanh")
    return f1, f2, f3, c


if __name__ == "__main__":
    # Small shapes consistent with the module's structure
    # (original: 1000 -> 4096 -> 2048 -> 512 -> 64; scaled down here).
    # TEXT_LENGTH=200 deliberately exercises the un-padded, non-128-multiple
    # contraction dim, mirroring the real text_length=1000.
    B = 8
    TEXT_LENGTH, D1, D2, D3, CODE_LEN = 200, 512, 256, 128, 64

    key = jax.random.PRNGKey(0)
    key, kx = jax.random.split(key)
    x = jax.random.normal(kx, (B, TEXT_LENGTH), jnp.float32)
    params = init_params(key, TEXT_LENGTH, D1, D2, D3, CODE_LEN)

    fwd = jax.jit(txtnet_s_forward)
    outs = jax.block_until_ready(fwd(x, params))
    refs = txtnet_s_ref(x, params)

    for o, r in zip(outs, refs):
        assert o.shape == r.shape and o.dtype == r.dtype
        err = float(jnp.max(jnp.abs(o - r)))
        assert jnp.allclose(o, r, atol=5e-3, rtol=5e-3), \
            f"mismatch, max err {err}"

    print("KERNEL_OK")
</pallas_src>

<mosaic_0001>
module attributes {stable_mosaic.version = 11 : i64} {
  func.func @_fused_txtnet_kernel(%arg0: i32, %arg1: memref<8x200xbf16, #tpu.memory_space<vmem>>, %arg2: memref<200x512xbf16, #tpu.memory_space<any>>, %arg3: memref<512x256xbf16, #tpu.memory_space<any>>, %arg4: memref<256x128xbf16, #tpu.memory_space<any>>, %arg5: memref<128x64xbf16, #tpu.memory_space<any>>, %arg6: memref<1x512xf32, #tpu.memory_space<vmem>>, %arg7: memref<1x512xf32, #tpu.memory_space<vmem>>, %arg8: memref<1x256xf32, #tpu.memory_space<vmem>>, %arg9: memref<1x256xf32, #tpu.memory_space<vmem>>, %arg10: memref<1x128xf32, #tpu.memory_space<vmem>>, %arg11: memref<1x128xf32, #tpu.memory_space<vmem>>, %arg12: memref<1x64xf32, #tpu.memory_space<vmem>>, %arg13: memref<1x64xf32, #tpu.memory_space<vmem>>, %arg14: memref<8x512xf32, #tpu.memory_space<vmem>>, %arg15: memref<8x256xf32, #tpu.memory_space<vmem>>, %arg16: memref<8x128xf32, #tpu.memory_space<vmem>>, %arg17: memref<8x64xf32, #tpu.memory_space<vmem>>, %arg18: memref<8x512xbf16, #tpu.memory_space<vmem>>, %arg19: memref<8x256xbf16, #tpu.memory_space<vmem>>, %arg20: memref<8x128xbf16, #tpu.memory_space<vmem>>, %arg21: memref<1x200x512xbf16, #tpu.memory_space<vmem>>, %arg22: memref<1x512x256xbf16, #tpu.memory_space<vmem>>, %arg23: memref<1x256x128xbf16, #tpu.memory_space<vmem>>, %arg24: memref<1x128x64xbf16, #tpu.memory_space<vmem>>, %arg25: memref<4x2x!tpu.dma_semaphore, #tpu.memory_space<semaphore_mem>>) attributes {dimension_semantics = [#tpu.dimension_semantics<arbitrary>], iteration_bounds = array<i64: 1>, scalar_prefetch = 0 : i64, scratch_operands = 8 : i64, tpu.core_type = #tpu.core_type<tc>, window_params = [{pipeline_mode = #tpu.pipeline_mode<synchronous>, transform_indices = @transform_0, window_bounds = array<i64: 8, 200>}, {}, {}, {}, {}, {pipeline_mode = #tpu.pipeline_mode<synchronous>, transform_indices = @transform_5, window_bounds = array<i64: 1, 512>}, {pipeline_mode = #tpu.pipeline_mode<synchronous>, transform_indices = @transform_6, window_bounds = array<i64: 1, 512>}, {pipeline_mode = #tpu.pipeline_mode<synchronous>, transform_indices = @transform_7, window_bounds = array<i64: 1, 256>}, {pipeline_mode = #tpu.pipeline_mode<synchronous>, transform_indices = @transform_8, window_bounds = array<i64: 1, 256>}, {pipeline_mode = #tpu.pipeline_mode<synchronous>, transform_indices = @transform_9, window_bounds = array<i64: 1, 128>}, {pipeline_mode = #tpu.pipeline_mode<synchronous>, transform_indices = @transform_10, window_bounds = array<i64: 1, 128>}, {pipeline_mode = #tpu.pipeline_mode<synchronous>, transform_indices = @transform_11, window_bounds = array<i64: 1, 64>}, {pipeline_mode = #tpu.pipeline_mode<synchronous>, transform_indices = @transform_12, window_bounds = array<i64: 1, 64>}, {pipeline_mode = #tpu.pipeline_mode<synchronous>, transform_indices = @transform_13, window_bounds = array<i64: 8, 512>}, {pipeline_mode = #tpu.pipeline_mode<synchronous>, transform_indices = @transform_14, window_bounds = array<i64: 8, 256>}, {pipeline_mode = #tpu.pipeline_mode<synchronous>, transform_indices = @transform_15, window_bounds = array<i64: 8, 128>}, {pipeline_mode = #tpu.pipeline_mode<synchronous>, transform_indices = @transform_16, window_bounds = array<i64: 8, 64>}]} {
    %c0_i32 = arith.constant 0 : i32
    %c0_i32_0 = arith.constant 0 : i32
    %c0_i32_1 = arith.constant 0 : i32
    %c0_i32_2 = arith.constant 0 : i32
    %c0_i32_3 = arith.constant 0 : i32
    %0 = tpu.memref_slice %arg2[%c0_i32_2, %c0_i32_3] : memref<200x512xbf16, #tpu.memory_space<any>> -> memref<200x512xbf16, #tpu.memory_space<any>>
    %c0_i32_4 = arith.constant 0 : i32
    %c0_i32_5 = arith.constant 0 : i32
    %1 = tpu.memref_slice %arg21[%c0_i32, %c0_i32_4, %c0_i32_5] : memref<1x200x512xbf16, #tpu.memory_space<vmem>> -> memref<1x200x512xbf16, #tpu.memory_space<vmem>>
    %2 = tpu.memref_squeeze %1 : memref<1x200x512xbf16, #tpu.memory_space<vmem>> -> memref<200x512xbf16, #tpu.memory_space<vmem>>
    %3 = tpu.memref_slice %arg25[%c0_i32_0, %c0_i32_1] : memref<4x2x!tpu.dma_semaphore, #tpu.memory_space<semaphore_mem>> -> memref<1x1x!tpu.dma_semaphore, #tpu.memory_space<semaphore_mem>>
    %4 = tpu.memref_squeeze %3 : memref<1x1x!tpu.dma_semaphore, #tpu.memory_space<semaphore_mem>> -> memref<!tpu.dma_semaphore, #tpu.memory_space<semaphore_mem>>
    tpu.enqueue_dma source(%0 : memref<200x512xbf16, #tpu.memory_space<any>>) target(%2 : memref<200x512xbf16, #tpu.memory_space<vmem>>) target_semaphore(%4 : memref<!tpu.dma_semaphore, #tpu.memory_space<semaphore_mem>>)
    %c0 = arith.constant 0 : index
    %c0_6 = arith.constant 0 : index
    %5 = vector.load %arg1[%c0, %c0_6] : memref<8x200xbf16, #tpu.memory_space<vmem>>, vector<8x200xbf16>
    %c0_i32_7 = arith.constant 0 : i32
    %c0_i32_8 = arith.constant 0 : i32
    %c0_i32_9 = arith.constant 0 : i32
    %c0_i32_10 = arith.constant 0 : i32
    %c0_i32_11 = arith.constant 0 : i32
    %6 = tpu.memref_slice %arg2[%c0_i32_10, %c0_i32_11] : memref<200x512xbf16, #tpu.memory_space<any>> -> memref<200x512xbf16, #tpu.memory_space<any>>
    %c0_i32_12 = arith.constant 0 : i32
    %c0_i32_13 = arith.constant 0 : i32
    %7 = tpu.memref_slice %arg21[%c0_i32_7, %c0_i32_12, %c0_i32_13] : memref<1x200x512xbf16, #tpu.memory_space<vmem>> -> memref<1x200x512xbf16, #tpu.memory_space<vmem>>
    %8 = tpu.memref_squeeze %7 : memref<1x200x512xbf16, #tpu.memory_space<vmem>> -> memref<200x512xbf16, #tpu.memory_space<vmem>>
    %9 = tpu.memref_slice %arg25[%c0_i32_8, %c0_i32_9] : memref<4x2x!tpu.dma_semaphore, #tpu.memory_space<semaphore_mem>> -> memref<1x1x!tpu.dma_semaphore, #tpu.memory_space<semaphore_mem>>
    %10 = tpu.memref_squeeze %9 : memref<1x1x!tpu.dma_semaphore, #tpu.memory_space<semaphore_mem>> -> memref<!tpu.dma_semaphore, #tpu.memory_space<semaphore_mem>>
    tpu.wait_dma2 semaphore(%10 : memref<!tpu.dma_semaphore, #tpu.memory_space<semaphore_mem>>) src(%6 : memref<200x512xbf16, #tpu.memory_space<any>>) dst(%8 : memref<200x512xbf16, #tpu.memory_space<vmem>>)
    %c0_i32_14 = arith.constant 0 : i32
    %c1_i32 = arith.constant 1 : i32
    %c0_i32_15 = arith.constant 0 : i32
    %c0_i32_16 = arith.constant 0 : i32
    %c0_i32_17 = arith.constant 0 : i32
    %11 = tpu.memref_slice %arg3[%c0_i32_16, %c0_i32_17] : memref<512x256xbf16, #tpu.memory_space<any>> -> memref<512x256xbf16, #tpu.memory_space<any>>
    %c0_i32_18 = arith.constant 0 : i32
    %c0_i32_19 = arith.constant 0 : i32
    %12 = tpu.memref_slice %arg22[%c0_i32_14, %c0_i32_18, %c0_i32_19] : memref<1x512x256xbf16, #tpu.memory_space<vmem>> -> memref<1x512x256xbf16, #tpu.memory_space<vmem>>
    %13 = tpu.memref_squeeze %12 : memref<1x512x256xbf16, #tpu.memory_space<vmem>> -> memref<512x256xbf16, #tpu.memory_space<vmem>>
    %14 = tpu.memref_slice %arg25[%c1_i32, %c0_i32_15] : memref<4x2x!tpu.dma_semaphore, #tpu.memory_space<semaphore_mem>> -> memref<1x1x!tpu.dma_semaphore, #tpu.memory_space<semaphore_mem>>
    %15 = tpu.memref_squeeze %14 : memref<1x1x!tpu.dma_semaphore, #tpu.memory_space<semaphore_mem>> -> memref<!tpu.dma_semaphore, #tpu.memory_space<semaphore_mem>>
    tpu.enqueue_dma source(%11 : memref<512x256xbf16, #tpu.memory_space<any>>) target(%13 : memref<512x256xbf16, #tpu.memory_space<vmem>>) target_semaphore(%15 : memref<!tpu.dma_semaphore, #tpu.memory_space<semaphore_mem>>)
    %c0_20 = arith.constant 0 : index
    %c0_21 = arith.constant 0 : index
    %c0_22 = arith.constant 0 : index
    %16 = vector.load %arg21[%c0_20, %c0_21, %c0_22] : memref<1x200x512xbf16, #tpu.memory_space<vmem>>, vector<1x200x512xbf16>
    %17 = vector.shape_cast %16 : vector<1x200x512xbf16> to vector<200x512xbf16>
    %cst = arith.constant dense<0.000000e+00> : vector<8x512xf32>
    %18 = tpu.matmul %5, %17, %cst {dimension_numbers = #tpu.dot_dimension_numbers<[1], [0], [0], [1], [0, 0, 1, 1], [], []>} : vector<8x200xbf16>, vector<200x512xbf16>, vector<8x512xf32> -> vector<8x512xf32>
    %c0_23 = arith.constant 0 : index
    %c0_24 = arith.constant 0 : index
    %19 = vector.load %arg6[%c0_23, %c0_24] : memref<1x512xf32, #tpu.memory_space<vmem>>, vector<1x512xf32>
    %c0_25 = arith.constant 0 : index
    %c0_26 = arith.constant 0 : index
    %20 = vector.load %arg7[%c0_25, %c0_26] : memref<1x512xf32, #tpu.memory_space<vmem>>, vector<1x512xf32>
    %cst_27 = arith.constant dense<0.000000e+00> : vector<512xf32>
    %21 = vector.multi_reduction <add>, %18, %cst_27 [0] : vector<8x512xf32> to vector<512xf32>
    %22 = vector.shape_cast %21 : vector<512xf32> to vector<1x512xf32>
    %cst_28 = arith.constant 1.250000e-01 : f32
    %23 = vector.broadcast %cst_28 : f32 to vector<1x512xf32>
    %24 = arith.mulf %22, %23 : vector<1x512xf32>
    %25 = vector.broadcast %24 : vector<1x512xf32> to vector<8x512xf32>
    %26 = arith.subf %18, %25 : vector<8x512xf32>
    %27 = arith.mulf %26, %26 : vector<8x512xf32>
    %cst_29 = arith.constant dense<0.000000e+00> : vector<512xf32>
    %28 = vector.multi_reduction <add>, %27, %cst_29 [0] : vector<8x512xf32> to vector<512xf32>
    %29 = vector.shape_cast %28 : vector<512xf32> to vector<1x512xf32>
    %cst_30 = arith.constant 1.250000e-01 : f32
    %30 = vector.broadcast %cst_30 : f32 to vector<1x512xf32>
    %31 = arith.mulf %29, %30 : vector<1x512xf32>
    %cst_31 = arith.constant 9.99999974E-6 : f32
    %32 = vector.broadcast %cst_31 : f32 to vector<1x512xf32>
    %33 = arith.addf %31, %32 : vector<1x512xf32>
    %34 = math.rsqrt %33 : vector<1x512xf32>
    %35 = vector.broadcast %34 : vector<1x512xf32> to vector<8x512xf32>
    %36 = arith.mulf %26, %35 : vector<8x512xf32>
    %37 = vector.broadcast %19 : vector<1x512xf32> to vector<8x512xf32>
    %38 = arith.mulf %36, %37 : vector<8x512xf32>
    %39 = vector.broadcast %20 : vector<1x512xf32> to vector<8x512xf32>
    %40 = arith.addf %38, %39 : vector<8x512xf32>
    %cst_32 = arith.constant 0.000000e+00 : f32
    %41 = vector.broadcast %cst_32 : f32 to vector<8x512xf32>
    %42 = arith.maximumf %40, %41 : vector<8x512xf32>
    %c0_33 = arith.constant 0 : index
    %c0_34 = arith.constant 0 : index
    %43 = vector.load %arg14[%c0_33, %c0_34] : memref<8x512xf32, #tpu.memory_space<vmem>>, vector<8x512xf32>
    tpu.vector_store %arg14[%c0_33, %c0_34], %42 {strides = array<i32>} : memref<8x512xf32, #tpu.memory_space<vmem>>, vector<8x512xf32>,
    %44 = arith.truncf %42 : vector<8x512xf32> to vector<8x512xbf16>
    %c0_35 = arith.constant 0 : index
    %c0_36 = arith.constant 0 : index
    %45 = vector.load %arg18[%c0_35, %c0_36] : memref<8x512xbf16, #tpu.memory_space<vmem>>, vector<8x512xbf16>
    tpu.vector_store %arg18[%c0_35, %c0_36], %44 {strides = array<i32>} : memref<8x512xbf16, #tpu.memory_space<vmem>>, vector<8x512xbf16>,
    %c0_37 = arith.constant 0 : index
    %c0_38 = arith.constant 0 : index
    %46 = vector.load %arg18[%c0_37, %c0_38] : memref<8x512xbf16, #tpu.memory_space<vmem>>, vector<8x512xbf16>
    %c0_i32_39 = arith.constant 0 : i32
    %c1_i32_40 = arith.constant 1 : i32
    %c0_i32_41 = arith.constant 0 : i32
    %c0_i32_42 = arith.constant 0 : i32
    %c0_i32_43 = arith.constant 0 : i32
    %47 = tpu.memref_slice %arg3[%c0_i32_42, %c0_i32_43] : memref<512x256xbf16, #tpu.memory_space<any>> -> memref<512x256xbf16, #tpu.memory_space<any>>
    %c0_i32_44 = arith.constant 0 : i32
    %c0_i32_45 = arith.constant 0 : i32
    %48 = tpu.memref_slice %arg22[%c0_i32_39, %c0_i32_44, %c0_i32_45] : memref<1x512x256xbf16, #tpu.memory_space<vmem>> -> memref<1x512x256xbf16, #tpu.memory_space<vmem>>
    %49 = tpu.memref_squeeze %48 : memref<1x512x256xbf16, #tpu.memory_space<vmem>> -> memref<512x256xbf16, #tpu.memory_space<vmem>>
    %50 = tpu.memref_slice %arg25[%c1_i32_40, %c0_i32_41] : memref<4x2x!tpu.dma_semaphore, #tpu.memory_space<semaphore_mem>> -> memref<1x1x!tpu.dma_semaphore, #tpu.memory_space<semaphore_mem>>
    %51 = tpu.memref_squeeze %50 : memref<1x1x!tpu.dma_semaphore, #tpu.memory_space<semaphore_mem>> -> memref<!tpu.dma_semaphore, #tpu.memory_space<semaphore_mem>>
    tpu.wait_dma2 semaphore(%51 : memref<!tpu.dma_semaphore, #tpu.memory_space<semaphore_mem>>) src(%47 : memref<512x256xbf16, #tpu.memory_space<any>>) dst(%49 : memref<512x256xbf16, #tpu.memory_space<vmem>>)
    %c0_i32_46 = arith.constant 0 : i32
    %c2_i32 = arith.constant 2 : i32
    %c0_i32_47 = arith.constant 0 : i32
    %c0_i32_48 = arith.constant 0 : i32
    %c0_i32_49 = arith.constant 0 : i32
    %52 = tpu.memref_slice %arg4[%c0_i32_48, %c0_i32_49] : memref<256x128xbf16, #tpu.memory_space<any>> -> memref<256x128xbf16, #tpu.memory_space<any>>
    %c0_i32_50 = arith.constant 0 : i32
    %c0_i32_51 = arith.constant 0 : i32
    %53 = tpu.memref_slice %arg23[%c0_i32_46, %c0_i32_50, %c0_i32_51] : memref<1x256x128xbf16, #tpu.memory_space<vmem>> -> memref<1x256x128xbf16, #tpu.memory_space<vmem>>
    %54 = tpu.memref_squeeze %53 : memref<1x256x128xbf16, #tpu.memory_space<vmem>> -> memref<256x128xbf16, #tpu.memory_space<vmem>>
    %55 = tpu.memref_slice %arg25[%c2_i32, %c0_i32_47] : memref<4x2x!tpu.dma_semaphore, #tpu.memory_space<semaphore_mem>> -> memref<1x1x!tpu.dma_semaphore, #tpu.memory_space<semaphore_mem>>
    %56 = tpu.memref_squeeze %55 : memref<1x1x!tpu.dma_semaphore, #tpu.memory_space<semaphore_mem>> -> memref<!tpu.dma_semaphore, #tpu.memory_space<semaphore_mem>>
    tpu.enqueue_dma source(%52 : memref<256x128xbf16, #tpu.memory_space<any>>) target(%54 : memref<256x128xbf16, #tpu.memory_space<vmem>>) target_semaphore(%56 : memref<!tpu.dma_semaphore, #tpu.memory_space<semaphore_mem>>)
    %c0_52 = arith.constant 0 : index
    %c0_53 = arith.constant 0 : index
    %c0_54 = arith.constant 0 : index
    %57 = vector.load %arg22[%c0_52, %c0_53, %c0_54] : memref<1x512x256xbf16, #tpu.memory_space<vmem>>, vector<1x512x256xbf16>
    %58 = vector.shape_cast %57 : vector<1x512x256xbf16> to vector<512x256xbf16>
    %cst_55 = arith.constant dense<0.000000e+00> : vector<8x256xf32>
    %59 = tpu.matmul %46, %58, %cst_55 {dimension_numbers = #tpu.dot_dimension_numbers<[1], [0], [0], [1], [0, 0, 1, 1], [], []>} : vector<8x512xbf16>, vector<512x256xbf16>, vector<8x256xf32> -> vector<8x256xf32>
    %c0_56 = arith.constant 0 : index
    %c0_57 = arith.constant 0 : index
    %60 = vector.load %arg8[%c0_56, %c0_57] : memref<1x256xf32, #tpu.memory_space<vmem>>, vector<1x256xf32>
    %c0_58 = arith.constant 0 : index
    %c0_59 = arith.constant 0 : index
    %61 = vector.load %arg9[%c0_58, %c0_59] : memref<1x256xf32, #tpu.memory_space<vmem>>, vector<1x256xf32>
    %cst_60 = arith.constant dense<0.000000e+00> : vector<256xf32>
    %62 = vector.multi_reduction <add>, %59, %cst_60 [0] : vector<8x256xf32> to vector<256xf32>
    %63 = vector.shape_cast %62 : vector<256xf32> to vector<1x256xf32>
    %cst_61 = arith.constant 1.250000e-01 : f32
    %64 = vector.broadcast %cst_61 : f32 to vector<1x256xf32>
    %65 = arith.mulf %63, %64 : vector<1x256xf32>
    %66 = vector.broadcast %65 : vector<1x256xf32> to vector<8x256xf32>
    %67 = arith.subf %59, %66 : vector<8x256xf32>
    %68 = arith.mulf %67, %67 : vector<8x256xf32>
    %cst_62 = arith.constant dense<0.000000e+00> : vector<256xf32>
    %69 = vector.multi_reduction <add>, %68, %cst_62 [0] : vector<8x256xf32> to vector<256xf32>
    %70 = vector.shape_cast %69 : vector<256xf32> to vector<1x256xf32>
    %cst_63 = arith.constant 1.250000e-01 : f32
    %71 = vector.broadcast %cst_63 : f32 to vector<1x256xf32>
    %72 = arith.mulf %70, %71 : vector<1x256xf32>
    %cst_64 = arith.constant 9.99999974E-6 : f32
    %73 = vector.broadcast %cst_64 : f32 to vector<1x256xf32>
    %74 = arith.addf %72, %73 : vector<1x256xf32>
    %75 = math.rsqrt %74 : vector<1x256xf32>
    %76 = vector.broadcast %75 : vector<1x256xf32> to vector<8x256xf32>
    %77 = arith.mulf %67, %76 : vector<8x256xf32>
    %78 = vector.broadcast %60 : vector<1x256xf32> to vector<8x256xf32>
    %79 = arith.mulf %77, %78 : vector<8x256xf32>
    %80 = vector.broadcast %61 : vector<1x256xf32> to vector<8x256xf32>
    %81 = arith.addf %79, %80 : vector<8x256xf32>
    %cst_65 = arith.constant 0.000000e+00 : f32
    %82 = vector.broadcast %cst_65 : f32 to vector<8x256xf32>
    %83 = arith.maximumf %81, %82 : vector<8x256xf32>
    %c0_66 = arith.constant 0 : index
    %c0_67 = arith.constant 0 : index
    %84 = vector.load %arg15[%c0_66, %c0_67] : memref<8x256xf32, #tpu.memory_space<vmem>>, vector<8x256xf32>
    tpu.vector_store %arg15[%c0_66, %c0_67], %83 {strides = array<i32>} : memref<8x256xf32, #tpu.memory_space<vmem>>, vector<8x256xf32>,
    %85 = arith.truncf %83 : vector<8x256xf32> to vector<8x256xbf16>
    %c0_68 = arith.constant 0 : index
    %c0_69 = arith.constant 0 : index
    %86 = vector.load %arg19[%c0_68, %c0_69] : memref<8x256xbf16, #tpu.memory_space<vmem>>, vector<8x256xbf16>
    tpu.vector_store %arg19[%c0_68, %c0_69], %85 {strides = array<i32>} : memref<8x256xbf16, #tpu.memory_space<vmem>>, vector<8x256xbf16>,
    %c0_70 = arith.constant 0 : index
    %c0_71 = arith.constant 0 : index
    %87 = vector.load %arg19[%c0_70, %c0_71] : memref<8x256xbf16, #tpu.memory_space<vmem>>, vector<8x256xbf16>
    %c0_i32_72 = arith.constant 0 : i32
    %c2_i32_73 = arith.constant 2 : i32
    %c0_i32_74 = arith.constant 0 : i32
    %c0_i32_75 = arith.constant 0 : i32
    %c0_i32_76 = arith.constant 0 : i32
    %88 = tpu.memref_slice %arg4[%c0_i32_75, %c0_i32_76] : memref<256x128xbf16, #tpu.memory_space<any>> -> memref<256x128xbf16, #tpu.memory_space<any>>
    %c0_i32_77 = arith.constant 0 : i32
    %c0_i32_78 = arith.constant 0 : i32
    %89 = tpu.memref_slice %arg23[%c0_i32_72, %c0_i32_77, %c0_i32_78] : memref<1x256x128xbf16, #tpu.memory_space<vmem>> -> memref<1x256x128xbf16, #tpu.memory_space<vmem>>
    %90 = tpu.memref_squeeze %89 : memref<1x256x128xbf16, #tpu.memory_space<vmem>> -> memref<256x128xbf16, #tpu.memory_space<vmem>>
    %91 = tpu.memref_slice %arg25[%c2_i32_73, %c0_i32_74] : memref<4x2x!tpu.dma_semaphore, #tpu.memory_space<semaphore_mem>> -> memref<1x1x!tpu.dma_semaphore, #tpu.memory_space<semaphore_mem>>
    %92 = tpu.memref_squeeze %91 : memref<1x1x!tpu.dma_semaphore, #tpu.memory_space<semaphore_mem>> -> memref<!tpu.dma_semaphore, #tpu.memory_space<semaphore_mem>>
    tpu.wait_dma2 semaphore(%92 : memref<!tpu.dma_semaphore, #tpu.memory_space<semaphore_mem>>) src(%88 : memref<256x128xbf16, #tpu.memory_space<any>>) dst(%90 : memref<256x128xbf16, #tpu.memory_space<vmem>>)
    %c0_i32_79 = arith.constant 0 : i32
    %c3_i32 = arith.constant 3 : i32
    %c0_i32_80 = arith.constant 0 : i32
    %c0_i32_81 = arith.constant 0 : i32
    %c0_i32_82 = arith.constant 0 : i32
    %93 = tpu.memref_slice %arg5[%c0_i32_81, %c0_i32_82] : memref<128x64xbf16, #tpu.memory_space<any>> -> memref<128x64xbf16, #tpu.memory_space<any>>
    %c0_i32_83 = arith.constant 0 : i32
    %c0_i32_84 = arith.constant 0 : i32
    %94 = tpu.memref_slice %arg24[%c0_i32_79, %c0_i32_83, %c0_i32_84] : memref<1x128x64xbf16, #tpu.memory_space<vmem>> -> memref<1x128x64xbf16, #tpu.memory_space<vmem>>
    %95 = tpu.memref_squeeze %94 : memref<1x128x64xbf16, #tpu.memory_space<vmem>> -> memref<128x64xbf16, #tpu.memory_space<vmem>>
    %96 = tpu.memref_slice %arg25[%c3_i32, %c0_i32_80] : memref<4x2x!tpu.dma_semaphore, #tpu.memory_space<semaphore_mem>> -> memref<1x1x!tpu.dma_semaphore, #tpu.memory_space<semaphore_mem>>
    %97 = tpu.memref_squeeze %96 : memref<1x1x!tpu.dma_semaphore, #tpu.memory_space<semaphore_mem>> -> memref<!tpu.dma_semaphore, #tpu.memory_space<semaphore_mem>>
    tpu.enqueue_dma source(%93 : memref<128x64xbf16, #tpu.memory_space<any>>) target(%95 : memref<128x64xbf16, #tpu.memory_space<vmem>>) target_semaphore(%97 : memref<!tpu.dma_semaphore, #tpu.memory_space<semaphore_mem>>)
    %c0_85 = arith.constant 0 : index
    %c0_86 = arith.constant 0 : index
    %c0_87 = arith.constant 0 : index
    %98 = vector.load %arg23[%c0_85, %c0_86, %c0_87] : memref<1x256x128xbf16, #tpu.memory_space<vmem>>, vector<1x256x128xbf16>
    %99 = vector.shape_cast %98 : vector<1x256x128xbf16> to vector<256x128xbf16>
    %cst_88 = arith.constant dense<0.000000e+00> : vector<8x128xf32>
    %100 = tpu.matmul %87, %99, %cst_88 {dimension_numbers = #tpu.dot_dimension_numbers<[1], [0], [0], [1], [0, 0, 1, 1], [], []>} : vector<8x256xbf16>, vector<256x128xbf16>, vector<8x128xf32> -> vector<8x128xf32>
    %c0_89 = arith.constant 0 : index
    %c0_90 = arith.constant 0 : index
    %101 = vector.load %arg10[%c0_89, %c0_90] : memref<1x128xf32, #tpu.memory_space<vmem>>, vector<1x128xf32>
    %c0_91 = arith.constant 0 : index
    %c0_92 = arith.constant 0 : index
    %102 = vector.load %arg11[%c0_91, %c0_92] : memref<1x128xf32, #tpu.memory_space<vmem>>, vector<1x128xf32>
    %cst_93 = arith.constant dense<0.000000e+00> : vector<128xf32>
    %103 = vector.multi_reduction <add>, %100, %cst_93 [0] : vector<8x128xf32> to vector<128xf32>
    %104 = vector.shape_cast %103 : vector<128xf32> to vector<1x128xf32>
    %cst_94 = arith.constant 1.250000e-01 : f32
    %105 = vector.broadcast %cst_94 : f32 to vector<1x128xf32>
    %106 = arith.mulf %104, %105 : vector<1x128xf32>
    %107 = vector.broadcast %106 : vector<1x128xf32> to vector<8x128xf32>
    %108 = arith.subf %100, %107 : vector<8x128xf32>
    %109 = arith.mulf %108, %108 : vector<8x128xf32>
    %cst_95 = arith.constant dense<0.000000e+00> : vector<128xf32>
    %110 = vector.multi_reduction <add>, %109, %cst_95 [0] : vector<8x128xf32> to vector<128xf32>
    %111 = vector.shape_cast %110 : vector<128xf32> to vector<1x128xf32>
    %cst_96 = arith.constant 1.250000e-01 : f32
    %112 = vector.broadcast %cst_96 : f32 to vector<1x128xf32>
    %113 = arith.mulf %111, %112 : vector<1x128xf32>
    %cst_97 = arith.constant 9.99999974E-6 : f32
    %114 = vector.broadcast %cst_97 : f32 to vector<1x128xf32>
    %115 = arith.addf %113, %114 : vector<1x128xf32>
    %116 = math.rsqrt %115 : vector<1x128xf32>
    %117 = vector.broadcast %116 : vector<1x128xf32> to vector<8x128xf32>
    %118 = arith.mulf %108, %117 : vector<8x128xf32>
    %119 = vector.broadcast %101 : vector<1x128xf32> to vector<8x128xf32>
    %120 = arith.mulf %118, %119 : vector<8x128xf32>
    %121 = vector.broadcast %102 : vector<1x128xf32> to vector<8x128xf32>
    %122 = arith.addf %120, %121 : vector<8x128xf32>
    %cst_98 = arith.constant 0.000000e+00 : f32
    %123 = vector.broadcast %cst_98 : f32 to vector<8x128xf32>
    %124 = arith.maximumf %122, %123 : vector<8x128xf32>
    %c0_99 = arith.constant 0 : index
    %c0_100 = arith.constant 0 : index
    %125 = vector.load %arg16[%c0_99, %c0_100] : memref<8x128xf32, #tpu.memory_space<vmem>>, vector<8x128xf32>
    tpu.vector_store %arg16[%c0_99, %c0_100], %124 {strides = array<i32>} : memref<8x128xf32, #tpu.memory_space<vmem>>, vector<8x128xf32>,
    %126 = arith.truncf %124 : vector<8x128xf32> to vector<8x128xbf16>
    %c0_101 = arith.constant 0 : index
    %c0_102 = arith.constant 0 : index
    %127 = vector.load %arg20[%c0_101, %c0_102] : memref<8x128xbf16, #tpu.memory_space<vmem>>, vector<8x128xbf16>
    tpu.vector_store %arg20[%c0_101, %c0_102], %126 {strides = array<i32>} : memref<8x128xbf16, #tpu.memory_space<vmem>>, vector<8x128xbf16>,
    %c0_103 = arith.constant 0 : index
    %c0_104 = arith.constant 0 : index
    %128 = vector.load %arg20[%c0_103, %c0_104] : memref<8x128xbf16, #tpu.memory_space<vmem>>, vector<8x128xbf16>
    %c0_i32_105 = arith.constant 0 : i32
    %c3_i32_106 = arith.constant 3 : i32
    %c0_i32_107 = arith.constant 0 : i32
    %c0_i32_108 = arith.constant 0 : i32
    %c0_i32_109 = arith.constant 0 : i32
    %129 = tpu.memref_slice %arg5[%c0_i32_108, %c0_i32_109] : memref<128x64xbf16, #tpu.memory_space<any>> -> memref<128x64xbf16, #tpu.memory_space<any>>
    %c0_i32_110 = arith.constant 0 : i32
    %c0_i32_111 = arith.constant 0 : i32
    %130 = tpu.memref_slice %arg24[%c0_i32_105, %c0_i32_110, %c0_i32_111] : memref<1x128x64xbf16, #tpu.memory_space<vmem>> -> memref<1x128x64xbf16, #tpu.memory_space<vmem>>
    %131 = tpu.memref_squeeze %130 : memref<1x128x64xbf16, #tpu.memory_space<vmem>> -> memref<128x64xbf16, #tpu.memory_space<vmem>>
    %132 = tpu.memref_slice %arg25[%c3_i32_106, %c0_i32_107] : memref<4x2x!tpu.dma_semaphore, #tpu.memory_space<semaphore_mem>> -> memref<1x1x!tpu.dma_semaphore, #tpu.memory_space<semaphore_mem>>
    %133 = tpu.memref_squeeze %132 : memref<1x1x!tpu.dma_semaphore, #tpu.memory_space<semaphore_mem>> -> memref<!tpu.dma_semaphore, #tpu.memory_space<semaphore_mem>>
    tpu.wait_dma2 semaphore(%133 : memref<!tpu.dma_semaphore, #tpu.memory_space<semaphore_mem>>) src(%129 : memref<128x64xbf16, #tpu.memory_space<any>>) dst(%131 : memref<128x64xbf16, #tpu.memory_space<vmem>>)
    %c0_112 = arith.constant 0 : index
    %c0_113 = arith.constant 0 : index
    %c0_114 = arith.constant 0 : index
    %134 = vector.load %arg24[%c0_112, %c0_113, %c0_114] : memref<1x128x64xbf16, #tpu.memory_space<vmem>>, vector<1x128x64xbf16>
    %135 = vector.shape_cast %134 : vector<1x128x64xbf16> to vector<128x64xbf16>
    %cst_115 = arith.constant dense<0.000000e+00> : vector<8x64xf32>
    %136 = tpu.matmul %128, %135, %cst_115 {dimension_numbers = #tpu.dot_dimension_numbers<[1], [0], [0], [1], [0, 0, 1, 1], [], []>} : vector<8x128xbf16>, vector<128x64xbf16>, vector<8x64xf32> -> vector<8x64xf32>
    %c0_116 = arith.constant 0 : index
    %c0_117 = arith.constant 0 : index
    %137 = vector.load %arg12[%c0_116, %c0_117] : memref<1x64xf32, #tpu.memory_space<vmem>>, vector<1x64xf32>
    %c0_118 = arith.constant 0 : index
    %c0_119 = arith.constant 0 : index
    %138 = vector.load %arg13[%c0_118, %c0_119] : memref<1x64xf32, #tpu.memory_space<vmem>>, vector<1x64xf32>
    %cst_120 = arith.constant dense<0.000000e+00> : vector<64xf32>
    %139 = vector.multi_reduction <add>, %136, %cst_120 [0] : vector<8x64xf32> to vector<64xf32>
    %140 = vector.shape_cast %139 : vector<64xf32> to vector<1x64xf32>
    %cst_121 = arith.constant 1.250000e-01 : f32
    %141 = vector.broadcast %cst_121 : f32 to vector<1x64xf32>
    %142 = arith.mulf %140, %141 : vector<1x64xf32>
    %143 = vector.broadcast %142 : vector<1x64xf32> to vector<8x64xf32>
    %144 = arith.subf %136, %143 : vector<8x64xf32>
    %145 = arith.mulf %144, %144 : vector<8x64xf32>
    %cst_122 = arith.constant dense<0.000000e+00> : vector<64xf32>
    %146 = vector.multi_reduction <add>, %145, %cst_122 [0] : vector<8x64xf32> to vector<64xf32>
    %147 = vector.shape_cast %146 : vector<64xf32> to vector<1x64xf32>
    %cst_123 = arith.constant 1.250000e-01 : f32
    %148 = vector.broadcast %cst_123 : f32 to vector<1x64xf32>
    %149 = arith.mulf %147, %148 : vector<1x64xf32>
    %cst_124 = arith.constant 9.99999974E-6 : f32
    %150 = vector.broadcast %cst_124 : f32 to vector<1x64xf32>
    %151 = arith.addf %149, %150 : vector<1x64xf32>
    %152 = math.rsqrt %151 : vector<1x64xf32>
    %153 = vector.broadcast %152 : vector<1x64xf32> to vector<8x64xf32>
    %154 = arith.mulf %144, %153 : vector<8x64xf32>
    %155 = vector.broadcast %137 : vector<1x64xf32> to vector<8x64xf32>
    %156 = arith.mulf %154, %155 : vector<8x64xf32>
    %157 = vector.broadcast %138 : vector<1x64xf32> to vector<8x64xf32>
    %158 = arith.addf %156, %157 : vector<8x64xf32>
    %159 = math.tanh %158 : vector<8x64xf32>
    %c0_125 = arith.constant 0 : index
    %c0_126 = arith.constant 0 : index
    %160 = vector.load %arg17[%c0_125, %c0_126] : memref<8x64xf32, #tpu.memory_space<vmem>>, vector<8x64xf32>
    tpu.vector_store %arg17[%c0_125, %c0_126], %159 {strides = array<i32>} : memref<8x64xf32, #tpu.memory_space<vmem>>, vector<8x64xf32>,
    return
  }
  func.func @transform_0(%arg0: i32) -> (i32, i32) {
    %c0_i32 = arith.constant 0 : i32
    %c0_i32_0 = arith.constant 0 : i32
    %c0_i32_1 = arith.constant 0 : i32
    return %c0_i32, %c0_i32_0 : i32, i32
  }
  func.func @transform_5(%arg0: i32) -> (i32, i32) {
    %c0_i32 = arith.constant 0 : i32
    %c0_i32_0 = arith.constant 0 : i32
    %c0_i32_1 = arith.constant 0 : i32
    return %c0_i32, %c0_i32_0 : i32, i32
  }
  func.func @transform_6(%arg0: i32) -> (i32, i32) {
    %c0_i32 = arith.constant 0 : i32
    %c0_i32_0 = arith.constant 0 : i32
    %c0_i32_1 = arith.constant 0 : i32
    return %c0_i32, %c0_i32_0 : i32, i32
  }
  func.func @transform_7(%arg0: i32) -> (i32, i32) {
    %c0_i32 = arith.constant 0 : i32
    %c0_i32_0 = arith.constant 0 : i32
    %c0_i32_1 = arith.constant 0 : i32
    return %c0_i32, %c0_i32_0 : i32, i32
  }
  func.func @transform_8(%arg0: i32) -> (i32, i32) {
    %c0_i32 = arith.constant 0 : i32
    %c0_i32_0 = arith.constant 0 : i32
    %c0_i32_1 = arith.constant 0 : i32
    return %c0_i32, %c0_i32_0 : i32, i32
  }
  func.func @transform_9(%arg0: i32) -> (i32, i32) {
    %c0_i32 = arith.constant 0 : i32
    %c0_i32_0 = arith.constant 0 : i32
    %c0_i32_1 = arith.constant 0 : i32
    return %c0_i32, %c0_i32_0 : i32, i32
  }
  func.func @transform_10(%arg0: i32) -> (i32, i32) {
    %c0_i32 = arith.constant 0 : i32
    %c0_i32_0 = arith.constant 0 : i32
    %c0_i32_1 = arith.constant 0 : i32
    return %c0_i32, %c0_i32_0 : i32, i32
  }
  func.func @transform_11(%arg0: i32) -> (i32, i32) {
    %c0_i32 = arith.constant 0 : i32
    %c0_i32_0 = arith.constant 0 : i32
    %c0_i32_1 = arith.constant 0 : i32
    return %c0_i32, %c0_i32_0 : i32, i32
  }
  func.func @transform_12(%arg0: i32) -> (i32, i32) {
    %c0_i32 = arith.constant 0 : i32
    %c0_i32_0 = arith.constant 0 : i32
    %c0_i32_1 = arith.constant 0 : i32
    return %c0_i32, %c0_i32_0 : i32, i32
  }
  func.func @transform_13(%arg0: i32) -> (i32, i32) {
    %c0_i32 = arith.constant 0 : i32
    %c0_i32_0 = arith.constant 0 : i32
    %c0_i32_1 = arith.constant 0 : i32
    return %c0_i32, %c0_i32_0 : i32, i32
  }
  func.func @transform_14(%arg0: i32) -> (i32, i32) {
    %c0_i32 = arith.constant 0 : i32
    %c0_i32_0 = arith.constant 0 : i32
    %c0_i32_1 = arith.constant 0 : i32
    return %c0_i32, %c0_i32_0 : i32, i32
  }
  func.func @transform_15(%arg0: i32) -> (i32, i32) {
    %c0_i32 = arith.constant 0 : i32
    %c0_i32_0 = arith.constant 0 : i32
    %c0_i32_1 = arith.constant 0 : i32
    return %c0_i32, %c0_i32_0 : i32, i32
  }
  func.func @transform_16(%arg0: i32) -> (i32, i32) {
    %c0_i32 = arith.constant 0 : i32
    %c0_i32_0 = arith.constant 0 : i32
    %c0_i32_1 = arith.constant 0 : i32
    return %c0_i32, %c0_i32_0 : i32, i32
  }
}

</mosaic_0001>

<bundles_post_ra>
// kernel: txtnet_s_forward.1
= control target key start
LH: loop header
LB: loop body
LE: loop exit
PB: predicated region body
PF: predicated region fallthrough
CT: control target
= control target key end

     0   :  { %s2137_s0 = inlined_call_operand.vmem [shape: bf16[8,200], index: 0, kind: input, shape index: {}]   ;;  %s2138_s1 = inlined_call_operand.hbm [shape: bf16[200,512], index: 1, kind: input, shape index: {}]   ;;  %s2139_s2 = inlined_call_operand.hbm [shape: bf16[512,256], index: 2, kind: input, shape index: {}]   ;;  %s2140_s3 = inlined_call_operand.vmem [shape: bf16[256,128], index: 3, kind: input, shape index: {}]   ;;  %s2141_s4 = inlined_call_operand.vmem [shape: bf16[128,64], index: 4, kind: input, shape index: {}]   ;;  %s2142_s5 = inlined_call_operand.vmem [shape: f32[1,512], index: 5, kind: input, shape index: {}]   ;;  %s2143_s6 = inlined_call_operand.vmem [shape: f32[1,512], index: 6, kind: input, shape index: {}]   ;;  %s2144_s7 = inlined_call_operand.vmem [shape: f32[1,256], index: 7, kind: input, shape index: {}]   ;;  %s2145_s8 = inlined_call_operand.vmem [shape: f32[1,256], index: 8, kind: input, shape index: {}]   ;;  %s2146_s9 = inlined_call_operand.vmem [shape: f32[1,128], index: 9, kind: input, shape index: {}]   ;;  %s2147_s10 = inlined_call_operand.vmem [shape: f32[1,128], index: 10, kind: input, shape index: {}]   ;;  %s2148_s11 = inlined_call_operand.vmem [shape: f32[1,64], index: 11, kind: input, shape index: {}]   ;;  %s2149_s12 = inlined_call_operand.vmem [shape: f32[1,64], index: 12, kind: input, shape index: {}]   ;;  %s2150_s13 = inlined_call_operand.hbm [shape: f32[8,512], index: 13, kind: output, shape index: {0}]   ;;  %s2151_s14 = inlined_call_operand.hbm [shape: f32[8,256], index: 14, kind: output, shape index: {1}]   ;;  %s2152_s15 = inlined_call_operand.hbm [shape: f32[8,128], index: 15, kind: output, shape index: {2}]   ;;  %s2153_s16 = inlined_call_operand.hbm [shape: f32[8,64], index: 16, kind: output, shape index: {3}]  }
   0x1   :  { %2154 = sst [smem:[#allocation32_spill]] %s2137_s0 }
   0x2   :  { %22 = vsyncpa [#allocation11], 0 }
   0x3   :  { %23 = vsyncpa [#allocation13], 0 }
   0x4   :  { %24 = vsyncpa [#allocation16], 0  ;;  %s2155_s23 = sld [smem:[#allocation32_spill]]  ;;  %s1734_s24 = smov [#allocation5]  }
   0x5   :  { %s51_s25 = sshll.u32 %s1734_s24, 4  ;;  %s1610_s28 = scalar_lea.hbm %s2138_s1, 6400  ;;  %s52_s25 = int_to_ptr.vmem [resolvable:$true] %s51_s25 }
   0x6   :  { %p1611_p0 = scmp.ne.s32.totalorder %s2138_s1, %s1610_s28  ;;  %p1614_p1 = scmp.lt.u32.totalorder %s1610_s28, %s2138_s1 }
   0x8   :  { %p1616_p2 = pnand %p1614_p1, %p1611_p0 }
   0xa   :  { %v1837_v0 = vld [vmem:[%s2155_s23] sm:$0xff] }
   0xb   :  { %1619 = shalt.err (!%p1616_p2)  }
   0xc   :  { %s1620_s18 = scalar_lea.vmem %s52_s25, 6400  ;;  %p1625_p4 = scmp.lt.s32.totalorder %s52_s25, %s52_s25 }
   0xd   :  { %p1621_p3 = scmp.ne.s32.totalorder %s52_s25, %s1620_s18  ;;  %p1626_p5 = scmp.lt.s32.totalorder %s1620_s18, %s1620_s18 }
   0xf   :  { %p1627_p6 = por %p1626_p5, %p1625_p4 }
  0x11   :  { %p1628_p7 = pnand %p1627_p6, %p1621_p3 }
  0x13   :  { %1631 = shalt.err (!%p1628_p7)  }
  0x14   :  { %54 = dma.hbm_to_vmem [thread:$0]  %s2138_s1, 6400, %s52_s25, [#allocation9] }
  0x15   :  { %1720 = dma.done.wait [#allocation9], 6400 }
  0x16   :  { %1721 = vsyncadd [#allocation9], 4294960896  ;;  %v1853_v1 = vcombine.high %v1837_v0, %v1837_v0  ;;  %vm402_vm0 = vcmask 588800   ;;  %s65_s21 = sld [smem:[#allocation0]]   ;;  %s1735_s22 = smov 256   ;;  %vm406_vm1 = vcmask 1043456   ;;  %v1358_v31 = vcombine.low %v1837_v0, %v1837_v0 }
  0x17   :  { %77 = sst [smem:[#allocation22]] %s1735_s22  ;;  %s1736_s23 = smov 2  }
  0x18   :  { %79 = sst [smem:[#allocation22 + $0x1]] %s1735_s22  ;;  %1413 = vmatprep.mubr.msk.bf16.mxu1 %vm402_vm0, %v1853_v1  ;;  %s1737_s24 = smov 64  }
  0x19   :  { %81 = sst [smem:[#allocation22 + $0x2]] %s1736_s23  ;;  %s1738_s26 = smov 128  }
  0x1a   :  { %83 = sst [smem:[#allocation22 + $0x3]] %s1737_s24  ;;  %s1739_s1 = smov [#allocation6]  }
  0x1b   :  { %85 = sst [smem:[#allocation22 + $0x4]] %s1738_s26  ;;  %s73_s25 = sshll.u32 %s1739_s1, 4  ;;  %s74_s25 = int_to_ptr.vmem [resolvable:$true] %s73_s25 }
  0x1c   :  { %87 = sst [smem:[#allocation22 + $0x5]] %s1736_s23  ;;  %s1356_s27 = sshll.u32 %s65_s21, 26 }
  0x1d   :  { %89 = sst [smem:[#allocation22 + $0x6]] %s1738_s26  ;;  %s1357_s28 = sadd.s32 134217728, %s1356_s27 }
  0x1e   :  { %91 = sst [smem:[#allocation22 + $0x7]] %s1737_s24  ;;  %s1740_s29 = smov 4  }
  0x1f   :  { %93 = sst [smem:[#allocation22 + $0x8]] %s1740_s29  ;;  %s1741_s30 = smov [#allocation9 + $0x2]  }
  0x20   :  { %s1742_s0 = smov [#allocation21]  }
  0x21   :  { %95 = dma.general %s2139_s2, 8192, %s74_s25, %s1741_s30, %s1742_s0, [#allocation22], %s1357_s28, 0  }
  0x22   :  { %v1516_v2 = vld [vmem:[#allocation5 + $0x4] ss:$16 sps:$4 sm:$0xff]   ;;  %v1518_v3 = vld [vmem:[#allocation5] ss:$16 sps:$4 sm:$0xff]   ;;  %v1556_v30 = vld [vmem:[#allocation5 + $0xc] ss:$16 sps:$4 sm:$0xff]  }
  0x23   :  { %419 = vmatprep.subr.bf16.mxu1 %v1516_v2  ;;  %v1519_v4 = vld [vmem:[#allocation5 + $0x24] ss:$16 sps:$4 sm:$0xff]   ;;  %v1521_v5 = vld [vmem:[#allocation5 + $0x20] ss:$16 sps:$4 sm:$0xff]   ;;  %v1554_v32 = vld [vmem:[#allocation5 + $0x8] ss:$16 sps:$4 sm:$0xff]  }
  0x24   :  { %420 = vmatpush1.bf16.msra.mxu1 %v1518_v3  ;;  %v1522_v6 = vld [vmem:[#allocation5 + $0x44] ss:$16 sps:$4 sm:$0xff]   ;;  %v1524_v7 = vld [vmem:[#allocation5 + $0x40] ss:$16 sps:$4 sm:$0xff]   ;;  %v1559_v33 = vld [vmem:[#allocation5 + $0x2c] ss:$16 sps:$4 sm:$0xff]  }
  0x25   :  { %421 = vmatprep.subr.bf16.mxu1 %v1519_v4  ;;  %v1525_v8 = vld [vmem:[#allocation5 + $0x64] ss:$16 sps:$4 sm:$0xff]   ;;  %v1527_v9 = vld [vmem:[#allocation5 + $0x60] ss:$16 sps:$4 sm:$0xff]   ;;  %v1557_v34 = vld [vmem:[#allocation5 + $0x28] ss:$16 sps:$4 sm:$0xff]  }
  0x26   :  { %v1528_v10 = vld [vmem:[#allocation5 + $0x84] ss:$16 sps:$4 sm:$0xff]   ;;  %v1530_v11 = vld [vmem:[#allocation5 + $0x80] ss:$16 sps:$4 sm:$0xff]   ;;  %v1562_v35 = vld [vmem:[#allocation5 + $0x4c] ss:$16 sps:$4 sm:$0xff]  }
  0x27   :  { %v1531_v12 = vld [vmem:[#allocation5 + $0xa4] ss:$16 sps:$4 sm:$0xff]   ;;  %v1533_v13 = vld [vmem:[#allocation5 + $0xa0] ss:$16 sps:$4 sm:$0xff]   ;;  %v1560_v36 = vld [vmem:[#allocation5 + $0x48] ss:$16 sps:$4 sm:$0xff]  }
  0x28   :  { %422 = vmatpush1.bf16.msra.mxu1 %v1521_v5  ;;  %v1534_v14 = vld [vmem:[#allocation5 + $0xc4] ss:$16 sps:$4 sm:$0xff]   ;;  %v1536_v15 = vld [vmem:[#allocation5 + $0xc0] ss:$16 sps:$4 sm:$0xff]   ;;  %v1565_v37 = vld [vmem:[#allocation5 + $0x6c] ss:$16 sps:$4 sm:$0xff]  }
  0x29   :  { %423 = vmatprep.subr.bf16.mxu1 %v1522_v6  ;;  %v1537_v16 = vld [vmem:[#allocation5 + $0xe4] ss:$16 sps:$4 sm:$0xff]   ;;  %v1539_v17 = vld [vmem:[#allocation5 + $0xe0] ss:$16 sps:$4 sm:$0xff]   ;;  %v1563_v38 = vld [vmem:[#allocation5 + $0x68] ss:$16 sps:$4 sm:$0xff]  }
  0x2a   :  { %v1540_v18 = vld [vmem:[#allocation5 + $0x104] ss:$16 sps:$4 sm:$0xff]   ;;  %v1542_v19 = vld [vmem:[#allocation5 + $0x100] ss:$16 sps:$4 sm:$0xff]   ;;  %v1568_v39 = vld [vmem:[#allocation5 + $0x8c] ss:$16 sps:$4 sm:$0xff]  }
  0x2b   :  { %v1543_v20 = vld [vmem:[#allocation5 + $0x124] ss:$16 sps:$4 sm:$0xff]   ;;  %v1545_v21 = vld [vmem:[#allocation5 + $0x120] ss:$16 sps:$4 sm:$0xff]   ;;  %v1566_v40 = vld [vmem:[#allocation5 + $0x88] ss:$16 sps:$4 sm:$0xff]  }
  0x2c   :  { %424 = vmatpush1.bf16.msra.mxu1 %v1524_v7  ;;  %v1546_v22 = vld [vmem:[#allocation5 + $0x144] ss:$16 sps:$4 sm:$0xff]   ;;  %v1548_v23 = vld [vmem:[#allocation5 + $0x140] ss:$16 sps:$4 sm:$0xff]   ;;  %v1571_v41 = vld [vmem:[#allocation5 + $0xac] ss:$16 sps:$4 sm:$0xff]  }
  0x2d   :  { %425 = vmatprep.subr.bf16.mxu1 %v1525_v8  ;;  %v1549_v24 = vld [vmem:[#allocation5 + $0x164] ss:$16 sps:$4 sm:$0xff]   ;;  %v1551_v26 = vld [vmem:[#allocation5 + $0x160] ss:$16 sps:$4 sm:$0xff]   ;;  %v1569_v42 = vld [vmem:[#allocation5 + $0xa8] ss:$16 sps:$4 sm:$0xff]  }
  0x2e   :  { %v144_v25 = vld [vmem:[#allocation5 + $0x180] sm:$0xff]  ;;  %v1574_v43 = vld [vmem:[#allocation5 + $0xcc] ss:$16 sps:$4 sm:$0xff]   ;;  %v1572_v44 = vld [vmem:[#allocation5 + $0xc8] ss:$16 sps:$4 sm:$0xff]  }
  0x2f   :  { %v1409_v27 = vcombine.high %v144_v25, %v144_v25  ;;  %v1408_v28 = vcombine.low %v144_v25, %v144_v25  ;;  %v1577_v45 = vld [vmem:[#allocation5 + $0xec] ss:$16 sps:$4 sm:$0xff]   ;;  %v1575_v46 = vld [vmem:[#allocation5 + $0xe8] ss:$16 sps:$4 sm:$0xff]  }
  0x30   :  { %426 = vmatpush1.bf16.msra.mxu1 %v1527_v9  ;;  %v1580_v47 = vld [vmem:[#allocation5 + $0x10c] ss:$16 sps:$4 sm:$0xff]   ;;  %v1578_v48 = vld [vmem:[#allocation5 + $0x108] ss:$16 sps:$4 sm:$0xff]  }
  0x31   :  { %427 = vmatprep.subr.bf16.mxu1 %v1528_v10  ;;  %v408_v29 = vsel %vm406_vm1, %v1408_v28, 0  ;;  %v1583_v49 = vld [vmem:[#allocation5 + $0x12c] ss:$16 sps:$4 sm:$0xff]   ;;  %v1581_v50 = vld [vmem:[#allocation5 + $0x128] ss:$16 sps:$4 sm:$0xff]  }
  0x32   :  { %v1586_v51 = vld [vmem:[#allocation5 + $0x14c] ss:$16 sps:$4 sm:$0xff]   ;;  %v1584_v52 = vld [vmem:[#allocation5 + $0x148] ss:$16 sps:$4 sm:$0xff]  }
  0x33   :  { %v1589_v53 = vld [vmem:[#allocation5 + $0x16c] ss:$16 sps:$4 sm:$0xff]   ;;  %v1587_v55 = vld [vmem:[#allocation5 + $0x168] ss:$16 sps:$4 sm:$0xff]  }
  0x34   :  { %428 = vmatpush1.bf16.msra.mxu1 %v1530_v11  ;;  %v145_v54 = vld [vmem:[#allocation5 + $0x188] sm:$0xff] }
  0x35   :  { %429 = vmatprep.subr.bf16.mxu1 %v1531_v12  ;;  %v1411_v56 = vcombine.high %v145_v54, %v145_v54  ;;  %v1410_v57 = vcombine.low %v145_v54, %v145_v54 }
  0x37   :  { %v414_v58 = vsel %vm406_vm1, %v1410_v57, 0 }
  0x38   :  { %430 = vmatpush1.bf16.msra.mxu1 %v1533_v13 }
  0x39   :  { %431 = vmatprep.subr.bf16.mxu1 %v1534_v14 }
  0x3c   :  { %432 = vmatpush1.bf16.msra.mxu1 %v1536_v15 }
  0x3d   :  { %433 = vmatprep.subr.bf16.mxu1 %v1537_v16 }
  0x40   :  { %434 = vmatpush1.bf16.msra.mxu1 %v1539_v17 }
  0x41   :  { %435 = vmatprep.subr.bf16.mxu1 %v1540_v18 }
  0x44   :  { %436 = vmatpush1.bf16.msra.mxu1 %v1542_v19 }
  0x45   :  { %437 = vmatprep.subr.bf16.mxu1 %v1543_v20 }
  0x48   :  { %438 = vmatpush1.bf16.msra.mxu1 %v1545_v21 }
  0x49   :  { %439 = vmatprep.subr.bf16.mxu1 %v1546_v22 }
  0x4c   :  { %440 = vmatpush1.bf16.msra.mxu1 %v1548_v23 }
  0x4d   :  { %441 = vmatprep.subr.bf16.mxu1 %v1549_v24 }
  0x50   :  { %442 = vmatpush1.bf16.msra.mxu1 %v1551_v26 }
  0x51   :  { %1412 = vmatprep.subr.msk.bf16.mxu1 %vm406_vm1, %v1409_v27 }
  0x54   :  { %444 = vmatpush1.bf16.msra.mxu1 %v408_v29 }
  0x55   :  { %460 = vmatprep.subr.bf16.mxu1 %v1556_v30  ;;  %v580_v30 = vlaneseq }
  0x57   :  { %452 = vmatmul.mubr.bf16.vlgmr.msra.gmra.mrb[0].mxu1 %v1358_v31 }
  0x58   :  { %461 = vmatpush1.bf16.msra.mxu1 %v1554_v32  ;;  %1415 = vmatprep.mubr.msk.bf16.mxu1 %vm402_vm0, %v1853_v1 }
  0x59   :  { %462 = vmatprep.subr.bf16.mxu1 %v1559_v33 }
  0x5c   :  { %463 = vmatpush1.bf16.msra.mxu1 %v1557_v34  ;;  %v1868_v34 = vshrl.u32 %v580_v30, 7 }
  0x5d   :  { %464 = vmatprep.subr.bf16.mxu1 %v1562_v35 }
  0x5e   :  { %v1871_v35 = vsub.s32 0, %v1868_v34 }
  0x60   :  { %465 = vmatpush1.bf16.msra.mxu1 %v1560_v36  ;;  %v1876_v36 = vld [vmem:[%s2142_s5] sm:$0xf] }
  0x61   :  { %466 = vmatprep.subr.bf16.mxu1 %v1565_v37  ;;  %v1879_v37 = vsub.s32 1, %v1868_v34 }
  0x64   :  { %467 = vmatpush1.bf16.msra.mxu1 %v1563_v38  ;;  %v1884_v38 = vld [vmem:[%s2143_s6] sm:$0xf] }
  0x65   :  { %468 = vmatprep.subr.bf16.mxu1 %v1568_v39  ;;  %v583_v39 = vrot.slane %v1876_v36, %v1871_v35 }
  0x68   :  { %469 = vmatpush1.bf16.msra.mxu1 %v1566_v40 }
  0x69   :  { %470 = vmatprep.subr.bf16.mxu1 %v1571_v41  ;;  %v587_v41 = vrot.slane %v1876_v36, %v1879_v37 }
  0x6c   :  { %471 = vmatpush1.bf16.msra.mxu1 %v1569_v42 }
  0x6d   :  { %472 = vmatprep.subr.bf16.mxu1 %v1574_v43 }
  0x70   :  { %473 = vmatpush1.bf16.msra.mxu1 %v1572_v44  ;;  %v608_v44 = vrot.slane %v1884_v38, %v1871_v35 }
  0x71   :  { %474 = vmatprep.subr.bf16.mxu1 %v1577_v45 }
  0x74   :  { %475 = vmatpush1.bf16.msra.mxu1 %v1575_v46  ;;  %v612_v46 = vrot.slane %v1884_v38, %v1879_v37 }
  0x75   :  { %476 = vmatprep.subr.bf16.mxu1 %v1580_v47 }
  0x78   :  { %477 = vmatpush1.bf16.msra.mxu1 %v1578_v48 }
  0x79   :  { %478 = vmatprep.subr.bf16.mxu1 %v1583_v49 }
  0x7c   :  { %479 = vmatpush1.bf16.msra.mxu1 %v1581_v50 }
  0x7d   :  { %480 = vmatprep.subr.bf16.mxu1 %v1586_v51 }
  0x80   :  { %481 = vmatpush1.bf16.msra.mxu1 %v1584_v52 }
  0x81   :  { %482 = vmatprep.subr.bf16.mxu1 %v1589_v53 }
  0x84   :  { %483 = vmatpush1.bf16.msra.mxu1 %v1587_v55 }
  0x85   :  { %1414 = vmatprep.subr.msk.bf16.mxu1 %vm406_vm1, %v1411_v56 }
  0x88   :  { %485 = vmatpush1.bf16.msra.mxu1 %v414_v58 }
  0x8b   :  { %493 = vmatmul.mubr.bf16.vlgmr.msra.gmra.mrb[4].mxu1 %v1358_v31 }
 0x12a   :  { %v453_v59 = vpop.f32.mrb[0].mxu1 }
 0x12b   :  { %v503_v60 = vrot.slane %v453_v59, 4  ;;  %v455_v61 = vpop.f32.mrb[1].mxu1 }
 0x12c   :  { %v509_v62 = vrot.slane %v455_v61, 4  ;;  %v457_v63 = vpop.f32.mrb[2].mxu1 }
 0x12d   :  { %v504_v0 = vadd.f32 %v503_v60, %v453_v59  ;;  %v458_v1 = vpop.f32.mrb[3].mxu1 }
 0x12e   :  { %v510_v2 = vadd.f32 %v509_v62, %v455_v61 }
 0x12f   :  { %v505_v3 = vrot.slane %v504_v0, 2 }
 0x130   :  { %v511_v4 = vrot.slane %v510_v2, 2 }
 0x131   :  { %v506_v5 = vadd.f32 %v505_v3, %v504_v0 }
 0x132   :  { %v512_v6 = vadd.f32 %v511_v4, %v510_v2 }
 0x133   :  { %v507_v7 = vrot.slane %v506_v5, 1 }
 0x134   :  { %v513_v8 = vrot.slane %v512_v6, 1 }
 0x135   :  { %v508_v9 = vadd.f32 %v507_v7, %v506_v5 }
 0x136   :  { %v514_v10 = vadd.f32 %v513_v8, %v512_v6 }
 0x137   :  { %v527_v11 = vmul.f32 0.125, %v508_v9 }
 0x138   :  { %v528_v12 = vmul.f32 0.125, %v514_v10 }
 0x139   :  { %v531_v13 = vsub.f32 %v453_v59, %v527_v11 }
 0x13a   :  { %v532_v14 = vsub.f32 %v455_v61, %v528_v12 }
 0x13b   :  { %v535_v15 = vmul.f32 %v531_v13, %v531_v13 }
 0x13c   :  { %v536_v16 = vmul.f32 %v532_v14, %v532_v14 }
 0x13d   :  { %v539_v17 = vrot.slane %v535_v15, 4 }
 0x13e   :  { %v545_v18 = vrot.slane %v536_v16, 4 }
 0x13f   :  { %v540_v19 = vadd.f32 %v539_v17, %v535_v15 }
 0x140   :  { %v546_v20 = vadd.f32 %v545_v18, %v536_v16 }
 0x141   :  { %v541_v21 = vrot.slane %v540_v19, 2 }
 0x142   :  { %v547_v22 = vrot.slane %v546_v20, 2 }
 0x143   :  { %v542_v23 = vadd.f32 %v541_v21, %v540_v19 }
 0x144   :  { %v548_v24 = vadd.f32 %v547_v22, %v546_v20 }
 0x145   :  { %v543_v25 = vrot.slane %v542_v23, 1 }
 0x146   :  { %v549_v26 = vrot.slane %v548_v24, 1 }
 0x147   :  { %v544_v27 = vadd.f32 %v543_v25, %v542_v23 }
 0x148   :  { %v550_v28 = vadd.f32 %v549_v26, %v548_v24 }
 0x149   :  { %v563_v29 = vmul.f32 0.125, %v544_v27  ;;  %v590_v27 = vsub.s32 2, %v1868_v34 }
 0x14a   :  { %v564_v31 = vmul.f32 0.125, %v550_v28  ;;  %v594_v28 = vsub.s32 3, %v1868_v34 }
 0x14b   :  { %v567_v32 = vadd.f32 1e-05, %v563_v29  ;;  %v591_v29 = vrot.slane %v1876_v36, %v590_v27 }
 0x14c   :  { %v568_v33 = vadd.f32 1e-05, %v564_v31  ;;  %v595_v31 = vrot.slane %v1876_v36, %v594_v28 }
 0x14d   :  { %1592 = vrsqrt.f32 %v567_v32 }
 0x14e   :  { %1594 = vrsqrt.f32 %v568_v33 }
 0x157   :  { %v1593_v40 = vpop.eup %1592 }
 0x158   :  { %v1595_v42 = vpop.eup %1594  ;;  %v575_v43 = vmul.f32 %v1593_v40, %v531_v13 }
 0x159   :  { %v576_v45 = vmul.f32 %v1595_v42, %v532_v14 }
 0x15a   :  { %v600_v47 = vmul.f32 %v583_v39, %v575_v43  ;;  %v616_v39 = vrot.slane %v1884_v38, %v590_v27 }
 0x15b   :  { %v601_v48 = vmul.f32 %v587_v41, %v576_v45  ;;  %v620_v41 = vrot.slane %v1884_v38, %v594_v28 }
 0x15c   :  { %v625_v49 = vadd.f32 %v608_v44, %v600_v47 }
 0x15d   :  { %v626_v50 = vadd.f32 %v612_v46, %v601_v48 }
 0x15e   :  { %v1894_v51 = vmax.f32 %v625_v49, 0.0  ;;  %v494_v52 = vpop.f32.mrb[4].mxu1 }
 0x15f   :  { %v1896_v53 = vmax.f32 %v626_v50, 0.0  ;;  %v515_v54 = vrot.slane %v494_v52, 4  ;;  %v496_v55 = vpop.f32.mrb[5].mxu1 }
 0x160   :  { %633 = vst [vmem:[#allocation10] sm:$0xff] %v1894_v51  ;;  %v521_v56 = vrot.slane %v496_v55, 4  ;;  %v498_v57 = vpop.f32.mrb[6].mxu1 }
 0x161   :  { %634 = vst [vmem:[#allocation10 + $0x8] sm:$0xff] %v1896_v53  ;;  %v516_v58 = vadd.f32 %v515_v54, %v494_v52  ;;  %v499_v59 = vpop.f32.mrb[7].mxu1 }
 0x162   :  { %v522_v60 = vadd.f32 %v521_v56, %v496_v55 }
 0x163   :  { %v517_v61 = vrot.slane %v516_v58, 2 }
 0x164   :  { %v523_v62 = vrot.slane %v522_v60, 2 }
 0x165   :  { %v518_v63 = vadd.f32 %v517_v61, %v516_v58 }
 0x166   :  { %v524_v0 = vadd.f32 %v523_v62, %v522_v60 }
 0x167   :  { %v519_v1 = vrot.slane %v518_v63, 1 }
 0x168   :  { %v525_v2 = vrot.slane %v524_v0, 1 }
 0x169   :  { %v520_v3 = vadd.f32 %v519_v1, %v518_v63 }
 0x16a   :  { %v526_v4 = vadd.f32 %v525_v2, %v524_v0 }
 0x16b   :  { %v529_v5 = vmul.f32 0.125, %v520_v3 }
 0x16c   :  { %v530_v6 = vmul.f32 0.125, %v526_v4 }
 0x16d   :  { %v533_v7 = vsub.f32 %v494_v52, %v529_v5 }
 0x16e   :  { %v534_v8 = vsub.f32 %v496_v55, %v530_v6 }
 0x16f   :  { %v537_v9 = vmul.f32 %v533_v7, %v533_v7 }
 0x170   :  { %v538_v10 = vmul.f32 %v534_v8, %v534_v8 }
 0x171   :  { %v551_v11 = vrot.slane %v537_v9, 4 }
 0x172   :  { %v557_v12 = vrot.slane %v538_v10, 4 }
 0x173   :  { %v552_v13 = vadd.f32 %v551_v11, %v537_v9 }
 0x174   :  { %v558_v14 = vadd.f32 %v557_v12, %v538_v10 }
 0x175   :  { %v553_v15 = vrot.slane %v552_v13, 2 }
 0x176   :  { %v559_v16 = vrot.slane %v558_v14, 2 }
 0x177   :  { %v554_v17 = vadd.f32 %v553_v15, %v552_v13 }
 0x178   :  { %v560_v18 = vadd.f32 %v559_v16, %v558_v14 }
 0x179   :  { %v555_v19 = vrot.slane %v554_v17, 1 }
 0x17a   :  { %v561_v20 = vrot.slane %v560_v18, 1 }
 0x17b   :  { %v556_v21 = vadd.f32 %v555_v19, %v554_v17 }
 0x17c   :  { %v562_v22 = vadd.f32 %v561_v20, %v560_v18 }
 0x17d   :  { %v565_v23 = vmul.f32 0.125, %v556_v21 }
 0x17e   :  { %v566_v24 = vmul.f32 0.125, %v562_v22 }
 0x17f   :  { %v569_v25 = vadd.f32 1e-05, %v565_v23 }
 0x180   :  { %v570_v26 = vadd.f32 1e-05, %v566_v24 }
 0x181   :  { %1596 = vrsqrt.f32 %v569_v25 }
 0x182   :  { %1598 = vrsqrt.f32 %v570_v26 }
 0x18b   :  { %v1597_v30 = vpop.eup %1596 }
 0x18c   :  { %v1599_v32 = vpop.eup %1598  ;;  %v577_v33 = vmul.f32 %v1597_v30, %v533_v7 }
 0x18d   :  { %v578_v40 = vmul.f32 %v1599_v32, %v534_v8 }
 0x18e   :  { %v602_v42 = vmul.f32 %v591_v29, %v577_v33 }
 0x18f   :  { %v603_v43 = vmul.f32 %v595_v31, %v578_v40 }
 0x190   :  { %v627_v44 = vadd.f32 %v616_v39, %v602_v42 }
 0x191   :  { %v628_v45 = vadd.f32 %v620_v41, %v603_v43 }
 0x192   :  { %v1906_v46 = vmax.f32 %v627_v44, 0.0 }
 0x193   :  { %v1908_v47 = vmax.f32 %v628_v45, 0.0 }
 0x194   :  { %635 = vst [vmem:[#allocation10 + $0x10] sm:$0xff] %v1906_v46 }
 0x195   :  { %636 = vst [vmem:[#allocation10 + $0x18] sm:$0xff] %v1908_v47 }
 0x196   :  { %1722 = dma.done.wait [#allocation9 + $0x2], 8192 }
 0x197   :  { %1723 = vsyncadd [#allocation9 + $0x2], 4294959104  ;;  %v1915_v34 = vld [vmem:[%s2140_s3] sm:$0xff]  ;;  %v1920_v36 = vld [vmem:[%s2140_s3 + $0x8] sm:$0xff] }
 0x198   :  { %v1925_v38 = vld [vmem:[%s2140_s3 + $0x10] sm:$0xff]  ;;  %v1930_v48 = vld [vmem:[%s2140_s3 + $0x18] sm:$0xff]  ;;  %v1935_v49 = vld [vmem:[%s2140_s3 + $0x20] sm:$0xff] }
 0x199   :  { %v1940_v50 = vld [vmem:[%s2140_s3 + $0x28] sm:$0xff]  ;;  %v1945_v52 = vld [vmem:[%s2140_s3 + $0x30] sm:$0xff]  ;;  %v1950_v54 = vld [vmem:[%s2140_s3 + $0x38] sm:$0xff] }
 0x19a   :  { %v1955_v55 = vld [vmem:[%s2140_s3 + $0x40] sm:$0xff]  ;;  %v1960_v56 = vld [vmem:[%s2140_s3 + $0x48] sm:$0xff]  ;;  %v1965_v57 = vld [vmem:[%s2140_s3 + $0x50] sm:$0xff] }
 0x19b   :  { %v1970_v58 = vld [vmem:[%s2140_s3 + $0x58] sm:$0xff]  ;;  %v1975_v59 = vld [vmem:[%s2140_s3 + $0x60] sm:$0xff]  ;;  %v1980_v60 = vld [vmem:[%s2140_s3 + $0x68] sm:$0xff] }
 0x19c   :  { %v1985_v61 = vld [vmem:[%s2140_s3 + $0x70] sm:$0xff]  ;;  %v1990_v62 = vld [vmem:[%s2140_s3 + $0x78] sm:$0xff] }
 0x19d   :  { %733 = vsyncadd [#allocation9 + $0x4], 2048  ;;  %v735_v63 = vld [vmem:[#allocation6 + $0x8] sm:$0xff]  ;;  %v734_v0 = vld [vmem:[#allocation6] sm:$0xff]  ;;  %v1441_v1 = vpack.c.bf16 %v1896_v53, %v1896_v53  ;;  %v1440_v32 = vpack.c.bf16 %v1894_v51, %v1894_v51  ;;  %v1443_v33 = vpack.c.bf16 %v1908_v47, %v1908_v47 }
 0x19e   :  { %812 = vmatprep.subr.bf16.mxu0 %v735_v63  ;;  %v737_v2 = vld [vmem:[#allocation6 + $0x18] sm:$0xff]  ;;  %v736_v3 = vld [vmem:[#allocation6 + $0x10] sm:$0xff]  ;;  %v739_v4 = vld [vmem:[#allocation6 + $0x28] sm:$0xff] }
 0x19f   :  { %813 = vmatpush1.bf16.msra.mxu0 %v734_v0  ;;  %844 = vmatprep.mubr.bf16.mxu0 %v1441_v1  ;;  %v738_v5 = vld [vmem:[#allocation6 + $0x20] sm:$0xff]  ;;  %v741_v6 = vld [vmem:[#allocation6 + $0x38] sm:$0xff]  ;;  %v740_v7 = vld [vmem:[#allocation6 + $0x30] sm:$0xff] }
 0x1a0   :  { %814 = vmatprep.subr.bf16.mxu0 %v737_v2  ;;  %v743_v8 = vld [vmem:[#allocation6 + $0x48] sm:$0xff]  ;;  %v742_v9 = vld [vmem:[#allocation6 + $0x40] sm:$0xff]  ;;  %v745_v10 = vld [vmem:[#allocation6 + $0x58] sm:$0xff] }
 0x1a1   :  { %v744_v53 = vld [vmem:[#allocation6 + $0x50] sm:$0xff]  ;;  %v747_v11 = vld [vmem:[#allocation6 + $0x68] sm:$0xff]  ;;  %v746_v12 = vld [vmem:[#allocation6 + $0x60] sm:$0xff] }
 0x1a2   :  { %v749_v13 = vld [vmem:[#allocation6 + $0x78] sm:$0xff]  ;;  %v748_v14 = vld [vmem:[#allocation6 + $0x70] sm:$0xff]  ;;  %v751_v15 = vld [vmem:[#allocation6 + $0x88] sm:$0xff] }
 0x1a3   :  { %815 = vmatpush1.bf16.msra.mxu0 %v736_v3  ;;  %v750_v16 = vld [vmem:[#allocation6 + $0x80] sm:$0xff]  ;;  %v753_v17 = vld [vmem:[#allocation6 + $0x98] sm:$0xff]  ;;  %v752_v18 = vld [vmem:[#allocation6 + $0x90] sm:$0xff] }
 0x1a4   :  { %816 = vmatprep.subr.bf16.mxu0 %v739_v4  ;;  %v755_v19 = vld [vmem:[#allocation6 + $0xa8] sm:$0xff]  ;;  %v754_v20 = vld [vmem:[#allocation6 + $0xa0] sm:$0xff]  ;;  %v757_v21 = vld [vmem:[#allocation6 + $0xb8] sm:$0xff] }
 0x1a5   :  { %v756_v22 = vld [vmem:[#allocation6 + $0xb0] sm:$0xff]  ;;  %v759_v23 = vld [vmem:[#allocation6 + $0xc8] sm:$0xff]  ;;  %v758_v24 = vld [vmem:[#allocation6 + $0xc0] sm:$0xff] }
 0x1a6   :  { %v761_v25 = vld [vmem:[#allocation6 + $0xd8] sm:$0xff]  ;;  %v760_v26 = vld [vmem:[#allocation6 + $0xd0] sm:$0xff]  ;;  %v763_v27 = vld [vmem:[#allocation6 + $0xe8] sm:$0xff] }
 0x1a7   :  { %817 = vmatpush1.bf16.msra.mxu0 %v738_v5  ;;  %v762_v28 = vld [vmem:[#allocation6 + $0xe0] sm:$0xff]  ;;  %v765_v29 = vld [vmem:[#allocation6 + $0xf8] sm:$0xff]  ;;  %v764_v30 = vld [vmem:[#allocation6 + $0xf0] sm:$0xff] }
 0x1a8   :  { %818 = vmatprep.subr.bf16.mxu0 %v741_v6  ;;  %v767_v31 = vld [vmem:[#allocation6 + $0x108] sm:$0xff]  ;;  %v766_v39 = vld [vmem:[#allocation6 + $0x100] sm:$0xff]  ;;  %v769_v40 = vld [vmem:[#allocation6 + $0x118] sm:$0xff] }
 0x1a9   :  { %v768_v41 = vld [vmem:[#allocation6 + $0x110] sm:$0xff]  ;;  %v771_v42 = vld [vmem:[#allocation6 + $0x128] sm:$0xff]  ;;  %v770_v43 = vld [vmem:[#allocation6 + $0x120] sm:$0xff] }
 0x1aa   :  { %v773_v44 = vld [vmem:[#allocation6 + $0x138] sm:$0xff]  ;;  %v772_v51 = vld [vmem:[#allocation6 + $0x130] sm:$0xff]  ;;  %v775_v45 = vld [vmem:[#allocation6 + $0x148] sm:$0xff] }
 0x1ab   :  { %819 = vmatpush1.bf16.msra.mxu0 %v740_v7  ;;  %v774_v47 = vld [vmem:[#allocation6 + $0x140] sm:$0xff]  ;;  %v777_v63 = vld [vmem:[#allocation6 + $0x158] sm:$0xff]  ;;  %v776_v0 = vld [vmem:[#allocation6 + $0x150] sm:$0xff] }
 0x1ac   :  { %820 = vmatprep.subr.bf16.mxu0 %v743_v8  ;;  %v779_v1 = vld [vmem:[#allocation6 + $0x168] sm:$0xff]  ;;  %v778_v2 = vld [vmem:[#allocation6 + $0x160] sm:$0xff]  ;;  %v781_v3 = vld [vmem:[#allocation6 + $0x178] sm:$0xff] }
 0x1ad   :  { %v780_v4 = vld [vmem:[#allocation6 + $0x170] sm:$0xff]  ;;  %v783_v5 = vld [vmem:[#allocation6 + $0x188] sm:$0xff]  ;;  %v782_v6 = vld [vmem:[#allocation6 + $0x180] sm:$0xff] }
 0x1ae   :  { %v785_v7 = vld [vmem:[#allocation6 + $0x198] sm:$0xff]  ;;  %v784_v8 = vld [vmem:[#allocation6 + $0x190] sm:$0xff] }
 0x1af   :  { %821 = vmatpush1.bf16.msra.mxu0 %v742_v9  ;;  %v787_v9 = vld [vmem:[#allocation6 + $0x1a8] sm:$0xff] }
 0x1b0   :  { %822 = vmatprep.subr.bf16.mxu0 %v745_v10  ;;  %v786_v10 = vld [vmem:[#allocation6 + $0x1a0] sm:$0xff] }
 0x1b3   :  { %823 = vmatpush1.bf16.msra.mxu0 %v744_v53  ;;  %v789_v53 = vld [vmem:[#allocation6 + $0x1b8] sm:$0xff] }
 0x1b4   :  { %824 = vmatprep.subr.bf16.mxu0 %v747_v11  ;;  %v788_v11 = vld [vmem:[#allocation6 + $0x1b0] sm:$0xff] }
 0x1b7   :  { %825 = vmatpush1.bf16.msra.mxu0 %v746_v12  ;;  %v791_v12 = vld [vmem:[#allocation6 + $0x1c8] sm:$0xff] }
 0x1b8   :  { %826 = vmatprep.subr.bf16.mxu0 %v749_v13  ;;  %v790_v13 = vld [vmem:[#allocation6 + $0x1c0] sm:$0xff] }
 0x1bb   :  { %827 = vmatpush1.bf16.msra.mxu0 %v748_v14  ;;  %v793_v14 = vld [vmem:[#allocation6 + $0x1d8] sm:$0xff] }
 0x1bc   :  { %828 = vmatprep.subr.bf16.mxu0 %v751_v15  ;;  %v792_v15 = vld [vmem:[#allocation6 + $0x1d0] sm:$0xff] }
 0x1bf   :  { %829 = vmatpush1.bf16.msra.mxu0 %v750_v16  ;;  %v795_v16 = vld [vmem:[#allocation6 + $0x1e8] sm:$0xff] }
 0x1c0   :  { %830 = vmatprep.subr.bf16.mxu0 %v753_v17  ;;  %v794_v17 = vld [vmem:[#allocation6 + $0x1e0] sm:$0xff] }
 0x1c3   :  { %831 = vmatpush1.bf16.msra.mxu0 %v752_v18  ;;  %v797_v18 = vld [vmem:[#allocation6 + $0x1f8] sm:$0xff] }
 0x1c4   :  { %832 = vmatprep.subr.bf16.mxu0 %v755_v19  ;;  %v796_v19 = vld [vmem:[#allocation6 + $0x1f0] sm:$0xff] }
 0x1c7   :  { %833 = vmatpush1.bf16.msra.mxu0 %v754_v20  ;;  %v1442_v20 = vpack.c.bf16 %v1906_v46, %v1906_v46 }
 0x1c8   :  { %834 = vmatprep.subr.bf16.mxu0 %v757_v21 }
 0x1cb   :  { %835 = vmatpush1.bf16.msra.mxu0 %v756_v22 }
 0x1cc   :  { %836 = vmatprep.subr.bf16.mxu0 %v759_v23 }
 0x1cf   :  { %837 = vmatpush1.bf16.msra.mxu0 %v758_v24 }
 0x1d0   :  { %838 = vmatprep.subr.bf16.mxu0 %v761_v25 }
 0x1d3   :  { %839 = vmatpush1.bf16.msra.mxu0 %v760_v26 }
 0x1d4   :  { %840 = vmatprep.subr.bf16.mxu0 %v763_v27 }
 0x1d7   :  { %841 = vmatpush1.bf16.msra.mxu0 %v762_v28 }
 0x1d8   :  { %842 = vmatprep.subr.bf16.mxu0 %v765_v29 }
 0x1db   :  { %843 = vmatpush1.bf16.msra.mxu0 %v764_v30 }
 0x1dc   :  { %853 = vmatprep.subr.bf16.mxu0 %v767_v31 }
 0x1de   :  { %845 = vmatmul.mubr.bf16.vlgmr.msra.gmra.mrb[0].mxu0 %v1440_v32 }
 0x1df   :  { %854 = vmatpush1.bf16.msra.mxu0 %v766_v39  ;;  %885 = vmatprep.mubr.bf16.mxu0 %v1443_v33 }
 0x1e0   :  { %855 = vmatprep.subr.bf16.mxu0 %v769_v40 }
 0x1e3   :  { %856 = vmatpush1.bf16.msra.mxu0 %v768_v41 }
 0x1e4   :  { %857 = vmatprep.subr.bf16.mxu0 %v771_v42 }
 0x1e7   :  { %858 = vmatpush1.bf16.msra.mxu0 %v770_v43 }
 0x1e8   :  { %859 = vmatprep.subr.bf16.mxu0 %v773_v44 }
 0x1eb   :  { %860 = vmatpush1.bf16.msra.mxu0 %v772_v51 }
 0x1ec   :  { %861 = vmatprep.subr.bf16.mxu0 %v775_v45 }
 0x1ef   :  { %862 = vmatpush1.bf16.msra.mxu0 %v774_v47 }
 0x1f0   :  { %863 = vmatprep.subr.bf16.mxu0 %v777_v63 }
 0x1f3   :  { %864 = vmatpush1.bf16.msra.mxu0 %v776_v0 }
 0x1f4   :  { %865 = vmatprep.subr.bf16.mxu0 %v779_v1 }
 0x1f7   :  { %866 = vmatpush1.bf16.msra.mxu0 %v778_v2 }
 0x1f8   :  { %867 = vmatprep.subr.bf16.mxu0 %v781_v3 }
 0x1fb   :  { %868 = vmatpush1.bf16.msra.mxu0 %v780_v4 }
 0x1fc   :  { %869 = vmatprep.subr.bf16.mxu0 %v783_v5 }
 0x1ff   :  { %870 = vmatpush1.bf16.msra.mxu0 %v782_v6 }
 0x200   :  { %871 = vmatprep.subr.bf16.mxu0 %v785_v7 }
 0x203   :  { %872 = vmatpush1.bf16.msra.mxu0 %v784_v8 }
 0x204   :  { %873 = vmatprep.subr.bf16.mxu0 %v787_v9 }
 0x207   :  { %874 = vmatpush1.bf16.msra.mxu0 %v786_v10 }
 0x208   :  { %875 = vmatprep.subr.bf16.mxu0 %v789_v53 }
 0x20b   :  { %876 = vmatpush1.bf16.msra.mxu0 %v788_v11 }
 0x20c   :  { %877 = vmatprep.subr.bf16.mxu0 %v791_v12 }
 0x20f   :  { %878 = vmatpush1.bf16.msra.mxu0 %v790_v13  ;;  %v894_v13 = vld [vmem:[%s2144_s7] sm:$0x3] }
 0x210   :  { %879 = vmatprep.subr.bf16.mxu0 %v793_v14  ;;  %v895_v14 = vld [vmem:[%s2145_s8] sm:$0x3] }
 0x213   :  { %880 = vmatpush1.bf16.msra.mxu0 %v792_v15  ;;  %v938_v15 = vrot.slane %v894_v13, %v1871_v35 }
 0x214   :  { %881 = vmatprep.subr.bf16.mxu0 %v795_v16 }
 0x217   :  { %882 = vmatpush1.bf16.msra.mxu0 %v794_v17  ;;  %v942_v17 = vrot.slane %v894_v13, %v1879_v37 }
 0x218   :  { %883 = vmatprep.subr.bf16.mxu0 %v797_v18 }
 0x21b   :  { %884 = vmatpush1.bf16.msra.mxu0 %v796_v19 }
 0x21e   :  { %886 = vmatmul.mubr.bf16.vlgmr.msra.gmra.mrb[0].mxu0 %v1442_v20  ;;  %v951_v20 = vrot.slane %v895_v14, %v1871_v35 }
 0x2f1   :  { %v887_v21 = vpop.f32.mrb[0].mxu0 }
 0x2f2   :  { %v896_v22 = vrot.slane %v887_v21, 4  ;;  %v889_v23 = vpop.f32.mrb[1].mxu0 }
 0x2f3   :  { %v902_v24 = vrot.slane %v889_v23, 4  ;;  %v891_v25 = vpop.f32.mrb[2].mxu0 }
 0x2f4   :  { %v897_v26 = vadd.f32 %v896_v22, %v887_v21  ;;  %v892_v27 = vpop.f32.mrb[3].mxu0  ;;  %v955_v22 = vrot.slane %v895_v14, %v1879_v37 }
 0x2f5   :  { %v903_v28 = vadd.f32 %v902_v24, %v889_v23 }
 0x2f6   :  { %v898_v29 = vrot.slane %v897_v26, 2 }
 0x2f7   :  { %v904_v30 = vrot.slane %v903_v28, 2 }
 0x2f8   :  { %v899_v31 = vadd.f32 %v898_v29, %v897_v26 }
 0x2f9   :  { %v905_v32 = vadd.f32 %v904_v30, %v903_v28 }
 0x2fa   :  { %v900_v33 = vrot.slane %v899_v31, 1 }
 0x2fb   :  { %v906_v39 = vrot.slane %v905_v32, 1 }
 0x2fc   :  { %v901_v40 = vadd.f32 %v900_v33, %v899_v31 }
 0x2fd   :  { %v907_v41 = vadd.f32 %v906_v39, %v905_v32 }
 0x2fe   :  { %v908_v42 = vmul.f32 0.125, %v901_v40 }
 0x2ff   :  { %v909_v46 = vmul.f32 0.125, %v907_v41 }
 0x300   :  { %v910_v43 = vsub.f32 %v887_v21, %v908_v42 }
 0x301   :  { %v911_v44 = vsub.f32 %v889_v23, %v909_v46 }
 0x302   :  { %v912_v51 = vmul.f32 %v910_v43, %v910_v43 }
 0x303   :  { %v913_v45 = vmul.f32 %v911_v44, %v911_v44 }
 0x304   :  { %v914_v47 = vrot.slane %v912_v51, 4 }
 0x305   :  { %v920_v63 = vrot.slane %v913_v45, 4 }
 0x306   :  { %v915_v0 = vadd.f32 %v914_v47, %v912_v51 }
 0x307   :  { %v921_v1 = vadd.f32 %v920_v63, %v913_v45 }
 0x308   :  { %v916_v2 = vrot.slane %v915_v0, 2 }
 0x309   :  { %v922_v3 = vrot.slane %v921_v1, 2 }
 0x30a   :  { %v917_v4 = vadd.f32 %v916_v2, %v915_v0 }
 0x30b   :  { %v923_v5 = vadd.f32 %v922_v3, %v921_v1 }
 0x30c   :  { %v918_v6 = vrot.slane %v917_v4, 1 }
 0x30d   :  { %v924_v7 = vrot.slane %v923_v5, 1 }
 0x30e   :  { %v919_v8 = vadd.f32 %v918_v6, %v917_v4 }
 0x30f   :  { %v925_v9 = vadd.f32 %v924_v7, %v923_v5 }
 0x310   :  { %v926_v10 = vmul.f32 0.125, %v919_v8 }
 0x311   :  { %v927_v53 = vmul.f32 0.125, %v925_v9 }
 0x312   :  { %v928_v11 = vadd.f32 1e-05, %v926_v10 }
 0x313   :  { %v929_v12 = vadd.f32 1e-05, %v927_v53 }
 0x314   :  { %1600 = vrsqrt.f32 %v928_v11 }
 0x315   :  { %1602 = vrsqrt.f32 %v929_v12 }
 0x31e   :  { %v1601_v16 = vpop.eup %1600 }
 0x31f   :  { %v1603_v18 = vpop.eup %1602  ;;  %v932_v19 = vmul.f32 %v1601_v16, %v910_v43 }
 0x320   :  { %v933_v21 = vmul.f32 %v1603_v18, %v911_v44 }
 0x321   :  { %v945_v23 = vmul.f32 %v938_v15, %v932_v19 }
 0x322   :  { %v946_v24 = vmul.f32 %v942_v17, %v933_v21 }
 0x323   :  { %v958_v25 = vadd.f32 %v951_v20, %v945_v23 }
 0x324   :  { %v959_v26 = vadd.f32 %v955_v22, %v946_v24 }
 0x325   :  { %v960_v27 = vmax.f32 %v958_v25, 0.0 }
 0x326   :  { %v961_v28 = vmax.f32 %v959_v26, 0.0 }
 0x327   :  { %962 = vst [vmem:[#allocation12] sm:$0xff] %v960_v27 }
 0x328   :  { %963 = vst [vmem:[#allocation12 + $0x8] sm:$0xff] %v961_v28 }
 0x329   :  { %1724 = dma.done.wait [#allocation9 + $0x4], 2048 }
 0x32a   :  { %1725 = vsyncadd [#allocation9 + $0x4], 4294965248  ;;  %v2013_v29 = vld [vmem:[%s2141_s4] sm:$0xff]  ;;  %v2018_v35 = vld [vmem:[%s2141_s4 + $0x8] sm:$0xff] }
 0x32b   :  { %v2023_v37 = vld [vmem:[%s2141_s4 + $0x10] sm:$0xff]  ;;  %v2028_v30 = vld [vmem:[%s2141_s4 + $0x18] sm:$0xff]  ;;  %v2033_v31 = vld [vmem:[%s2141_s4 + $0x20] sm:$0xff] }
 0x32c   :  { %v2038_v32 = vld [vmem:[%s2141_s4 + $0x28] sm:$0xff]  ;;  %v2043_v33 = vld [vmem:[%s2141_s4 + $0x30] sm:$0xff]  ;;  %v2048_v39 = vld [vmem:[%s2141_s4 + $0x38] sm:$0xff] }
 0x32d   :  { %1034 = vsyncadd [#allocation9 + $0x6], 1024  ;;  %1446 = vmatprep.subr.bf16.mxu0 %v1955_v55  ;;  %v1445_v40 = vpack.c.bf16 %v961_v28, %v961_v28  ;;  %v1425_v63 = vld [vmem:[%s2146_s9] ss:$0 sm:$0xff] }
 0x32e   :  { %1447 = vmatpush3.bf16.msra.mxu0 %v1915_v34  ;;  %v1444_v34 = vpack.c.bf16 %v960_v27, %v960_v27  ;;  %v1426_v1 = vld [vmem:[%s2147_s10] ss:$0 sm:$0xff] }
 0x32f   :  { %1448 = vmatprep.subr.bf16.mxu0 %v1960_v56  ;;  %1090 = vmatprep.mubr.bf16.mxu0 %v1445_v40 }
 0x332   :  { %1449 = vmatpush3.bf16.msra.mxu0 %v1920_v36 }
 0x333   :  { %1450 = vmatprep.subr.bf16.mxu0 %v1965_v57 }
 0x336   :  { %1451 = vmatpush3.bf16.msra.mxu0 %v1925_v38 }
 0x337   :  { %1452 = vmatprep.subr.bf16.mxu0 %v1970_v58 }
 0x33a   :  { %1453 = vmatpush3.bf16.msra.mxu0 %v1930_v48 }
 0x33b   :  { %1454 = vmatprep.subr.bf16.mxu0 %v1975_v59 }
 0x33e   :  { %1455 = vmatpush3.bf16.msra.mxu0 %v1935_v49 }
 0x33f   :  { %1456 = vmatprep.subr.bf16.mxu0 %v1980_v60 }
 0x342   :  { %1457 = vmatpush3.bf16.msra.mxu0 %v1940_v50 }
 0x343   :  { %1458 = vmatprep.subr.bf16.mxu0 %v1985_v61 }
 0x346   :  { %1459 = vmatpush3.bf16.msra.mxu0 %v1945_v52 }
 0x347   :  { %1460 = vmatprep.subr.bf16.mxu0 %v1990_v62 }
 0x34a   :  { %1461 = vmatpush3.bf16.msra.mxu0 %v1950_v54 }
 0x34d   :  { %1091 = vmatmul.mubr.bf16.vlgmr.msra.gmra.mrb[4].mxu0 %v1444_v34 }
 0x420   :  { %v1462_v36 = vpop.f32.mrb[4].mxu0 }
 0x421   :  { %v1463_v38 = vpop.f32.mrb[5].mxu0 }
 0x422   :  { %v1464_v48 = vadd.f32 %v1463_v38, %v1462_v36  ;;  %v1465_v55 = vpop.f32.mrb[6].mxu0 }
 0x423   :  { %v1466_v56 = vpop.f32.mrb[7].mxu0 }
 0x424   :  { %v1100_v49 = vrot.slane %v1464_v48, 4 }
 0x426   :  { %v1101_v57 = vadd.f32 %v1464_v48, %v1100_v49 }
 0x428   :  { %v1102_v58 = vrot.slane %v1101_v57, 2 }
 0x42a   :  { %v1103_v59 = vadd.f32 %v1102_v58, %v1101_v57 }
 0x42c   :  { %v1104_v50 = vrot.slane %v1103_v59, 1 }
 0x42e   :  { %v1105_v60 = vadd.f32 %v1104_v50, %v1103_v59 }
 0x430   :  { %v1106_v61 = vmul.f32 0.125, %v1105_v60 }
 0x432   :  { %v1107_v41 = vsub.f32 %v1464_v48, %v1106_v61 }
 0x434   :  { %v1108_v52 = vmul.f32 %v1107_v41, %v1107_v41 }
 0x436   :  { %v1109_v42 = vrot.slane %v1108_v52, 4 }
 0x438   :  { %v1110_v62 = vadd.f32 %v1109_v42, %v1108_v52 }
 0x43a   :  { %v1111_v46 = vrot.slane %v1110_v62, 2 }
 0x43c   :  { %v1112_v43 = vadd.f32 %v1111_v46, %v1110_v62 }
 0x43e   :  { %v1113_v54 = vrot.slane %v1112_v43, 1 }
 0x440   :  { %v1114_v44 = vadd.f32 %v1113_v54, %v1112_v43 }
 0x442   :  { %v1115_v51 = vmul.f32 0.125, %v1114_v44 }
 0x444   :  { %v1116_v45 = vadd.f32 1e-05, %v1115_v51 }
 0x446   :  { %1604 = vrsqrt.f32 %v1116_v45 }
 0x450   :  { %v1605_v47 = vpop.eup %1604 }
 0x451   :  { %v1118_v0 = vmul.f32 %v1605_v47, %v1107_v41 }
 0x453   :  { %v1125_v2 = vmul.f32 %v1425_v63, %v1118_v0 }
 0x455   :  { %v1132_v3 = vadd.f32 %v1426_v1, %v1125_v2 }
 0x457   :  { %v1133_v4 = vmax.f32 %v1132_v3, 0.0 }
 0x459   :  { %1134 = vst [vmem:[#allocation14] sm:$0xff] %v1133_v4  ;;  %v1135_v5 = vpack.c.bf16 %v1133_v4, %v1133_v4 }
 0x45b   :  { %1136 = vst [vmem:[#allocation4] sm:$0xf] %v1135_v5 }
 0x462   :  { %v1137_v6 = vld [vmem:[#allocation4] sm:$0xf] }
 0x463   :  { %1726 = dma.done.wait [#allocation9 + $0x6], 1024 }
 0x464   :  { %1727 = vsyncadd [#allocation9 + $0x6], 4294966272  ;;  %v1743_v7 = vmov 0.0   ;;  %vm1744_vm2 = vmmov 0   ;;  %s1745_s9 = smov [#allocation12]   ;;  %s1746_s17 = smov [#allocation10]  }
 0x465   :  { %1477 = vmatprep.subr.bf16.mxu1 %v1743_v7  ;;  %1493 = vmatprep.mubr.msk.bf16.mxu1 %vm1744_vm2, %v1743_v7  ;;  %s1246_s10 = sshll.u32 %s1745_s9, 4  ;;  %s1236_s18 = sshll.u32 %s1746_s17, 4  ;;  %s1247_s10 = int_to_ptr.vmem [resolvable:$true] %s1246_s10  ;;  %s1237_s18 = int_to_ptr.vmem [resolvable:$true] %s1236_s18 }
 0x466   :  { %1478 = vmatpush3.bf16.msra.mxu1 %v2013_v29  ;;  %s1632_s2 = scalar_lea.vmem %s1247_s10, 256  ;;  %p1637_p9 = scmp.lt.s32.totalorder %s1247_s10, %s1247_s10 }
 0x467   :  { %1479 = vmatprep.subr.bf16.mxu1 %v1743_v7  ;;  %p1633_p8 = scmp.ne.s32.totalorder %s1247_s10, %s1632_s2  ;;  %p1638_p10 = scmp.lt.s32.totalorder %s1632_s2, %s1632_s2 }
 0x469   :  { %p1639_p11 = por %p1638_p10, %p1637_p9 }
 0x46a   :  { %1480 = vmatpush3.bf16.msra.mxu1 %v2018_v35 }
 0x46b   :  { %1481 = vmatprep.subr.bf16.mxu1 %v1743_v7  ;;  %p1640_p12 = pnand %p1639_p11, %p1633_p8 }
 0x46e   :  { %1482 = vmatpush3.bf16.msra.mxu1 %v2023_v37 }
 0x46f   :  { %1483 = vmatprep.subr.bf16.mxu1 %v1743_v7 }
 0x472   :  { %1484 = vmatpush3.bf16.msra.mxu1 %v2028_v30 }
 0x473   :  { %1485 = vmatprep.subr.bf16.mxu1 %v1743_v7 }
 0x476   :  { %1486 = vmatpush3.bf16.msra.mxu1 %v2033_v31 }
 0x477   :  { %1487 = vmatprep.subr.bf16.mxu1 %v1743_v7 }
 0x47a   :  { %1488 = vmatpush3.bf16.msra.mxu1 %v2038_v32 }
 0x47b   :  { %1489 = vmatprep.subr.bf16.mxu1 %v1743_v7 }
 0x47e   :  { %1490 = vmatpush3.bf16.msra.mxu1 %v2043_v33 }
 0x47f   :  { %1491 = vmatprep.subr.bf16.mxu1 %v1743_v7 }
 0x482   :  { %1492 = vmatpush3.bf16.msra.mxu1 %v2048_v39 }
 0x485   :  { %1494 = vmatmul.mubr.bf16.vlgmr.msra.gmra.mrb[8].mxu1 %v1137_v6 }
 0x486   :  { %1643 = shalt.err (!%p1640_p12)
}
 0x487   :  { %s1644_s19 = scalar_lea.hbm %s2151_s14, 256 }
 0x488   :  { %p1645_p13 = scmp.ne.s32.totalorder %s2151_s14, %s1644_s19  ;;  %p1648_p0 = scmp.lt.u32.totalorder %s1644_s19, %s2151_s14 }
 0x48a   :  { %p1650_p1 = pnand %p1648_p0, %p1645_p13 }
 0x48c   :  { %1653 = shalt.err (!%p1650_p1)
}
 0x48d   :  { %1249 = dma.vmem_to_hbm [thread:$0]  %s1247_s10, 256, %s2151_s14, [#allocation13]  }
 0x48e   :  { %s1654_s24 = scalar_lea.vmem %s1237_s18, 512  ;;  %p1659_p3 = scmp.lt.s32.totalorder %s1237_s18, %s1237_s18 }
 0x48f   :  { %p1655_p2 = scmp.ne.s32.totalorder %s1237_s18, %s1654_s24  ;;  %p1660_p4 = scmp.lt.s32.totalorder %s1654_s24, %s1654_s24 }
 0x491   :  { %p1661_p5 = por %p1660_p4, %p1659_p3 }
 0x493   :  { %p1662_p6 = pnand %p1661_p5, %p1655_p2 }
 0x495   :  { %1665 = shalt.err (!%p1662_p6)
}
 0x496   :  { %s1666_s25 = scalar_lea.hbm %s2150_s13, 512 }
 0x497   :  { %p1667_p7 = scmp.ne.s32.totalorder %s2150_s13, %s1666_s25  ;;  %p1670_p8 = scmp.lt.u32.totalorder %s1666_s25, %s2150_s13 }
 0x499   :  { %p1672_p9 = pnand %p1670_p8, %p1667_p7 }
 0x49b   :  { %1675 = shalt.err (!%p1672_p9)
}
 0x49c   :  { %1239 = dma.vmem_to_hbm [thread:$0]  %s1237_s18, 512, %s2150_s13, [#allocation11]  }
 0x49d   :  { %s1747_s0 = smov [#allocation14]  }
 0x49e   :  { %s1256_s3 = sshll.u32 %s1747_s0, 4  ;;  %s1257_s3 = int_to_ptr.vmem [resolvable:$true] %s1256_s3 }
 0x49f   :  { %s1676_s9 = scalar_lea.vmem %s1257_s3, 128  ;;  %p1681_p11 = scmp.lt.s32.totalorder %s1257_s3, %s1257_s3 }
 0x4a0   :  { %p1677_p10 = scmp.ne.s32.totalorder %s1257_s3, %s1676_s9  ;;  %p1682_p12 = scmp.lt.s32.totalorder %s1676_s9, %s1676_s9 }
 0x4a2   :  { %p1683_p13 = por %p1682_p12, %p1681_p11 }
 0x4a4   :  { %p1684_p0 = pnand %p1683_p13, %p1677_p10 }
 0x4a6   :  { %1687 = shalt.err (!%p1684_p0)
}
 0x4a7   :  { %s1688_s2 = scalar_lea.hbm %s2152_s15, 128 }
 0x4a8   :  { %p1689_p1 = scmp.ne.s32.totalorder %s2152_s15, %s1688_s2  ;;  %p1692_p2 = scmp.lt.u32.totalorder %s1688_s2, %s2152_s15 }
 0x4aa   :  { %p1694_p3 = pnand %p1692_p2, %p1689_p1 }
 0x4ac   :  { %1697 = shalt.err (!%p1694_p3)
}
 0x4ad   :  { %1259 = dma.vmem_to_hbm [thread:$0]  %s1257_s3, 128, %s2152_s15, [#allocation13]   ;;  %vm1192_vm3 = vcmask 523264   ;;  %v1427_v37 = vld [vmem:[%s2148_s11] ss:$0 sm:$0xff] }
 0x4ae   :  { %v1428_v31 = vld [vmem:[%s2149_s12] ss:$0 sm:$0xff]  ;;  %s1748_s22 = smov [#allocation15]  }
 0x4af   :  { %s1266_s23 = sshll.u32 %s1748_s22, 4  ;;  %s1267_s23 = int_to_ptr.vmem [resolvable:$true] %s1266_s23 }
 0x4b0   :  { %s1698_s24 = scalar_lea.vmem %s1267_s23, 128  ;;  %p1703_p5 = scmp.lt.s32.totalorder %s1267_s23, %s1267_s23 }
 0x4b1   :  { %p1699_p4 = scmp.ne.s32.totalorder %s1267_s23, %s1698_s24  ;;  %p1704_p6 = scmp.lt.s32.totalorder %s1698_s24, %s1698_s24 }
 0x4b3   :  { %p1705_p7 = por %p1704_p6, %p1703_p5 }
 0x4b5   :  { %p1706_p8 = pnand %p1705_p7, %p1699_p4 }
 0x558   :  { %v1184_v8 = vpop.f32.mrb[8].mxu1 }
 0x559   :  { %v1193_v9 = vsel %vm1192_vm3, %v1184_v8, 0.0  ;;  %v1495_v10 = vpop.f32.mrb[9].mxu1 }
 0x55a   :  { %v1194_v53 = vrot.slane %v1193_v9, 4  ;;  %v1187_v11 = vpop.f32.mrb[10].mxu1 }
 0x55b   :  { %v1496_v12 = vpop.f32.mrb[11].mxu1 }
 0x55c   :  { %v1195_v13 = vadd.f32 %v1194_v53, %v1193_v9 }
 0x55e   :  { %v1196_v14 = vrot.slane %v1195_v13, 2 }
 0x560   :  { %v1197_v15 = vadd.f32 %v1196_v14, %v1195_v13 }
 0x562   :  { %v1198_v16 = vrot.slane %v1197_v15, 1 }
 0x564   :  { %v1199_v17 = vadd.f32 %v1198_v16, %v1197_v15 }
 0x566   :  { %v1200_v18 = vmul.f32 0.125, %v1199_v17 }
 0x568   :  { %v1201_v19 = vsub.f32 %v1184_v8, %v1200_v18 }
 0x56a   :  { %v1202_v20 = vmul.f32 %v1201_v19, %v1201_v19 }
 0x56c   :  { %v1203_v21 = vsel %vm1192_vm3, %v1202_v20, 0.0 }
 0x56d   :  { %v1204_v22 = vrot.slane %v1203_v21, 4 }
 0x56f   :  { %v1205_v23 = vadd.f32 %v1204_v22, %v1203_v21 }
 0x571   :  { %v1206_v24 = vrot.slane %v1205_v23, 2 }
 0x573   :  { %v1207_v25 = vadd.f32 %v1206_v24, %v1205_v23 }
 0x575   :  { %v1208_v26 = vrot.slane %v1207_v25, 1 }
 0x577   :  { %v1209_v27 = vadd.f32 %v1208_v26, %v1207_v25 }
 0x579   :  { %v1210_v28 = vmul.f32 0.125, %v1209_v27 }
 0x57b   :  { %v1211_v29 = vadd.f32 1e-05, %v1210_v28 }
 0x57d   :  { %1606 = vrsqrt.f32 %v1211_v29 }
 0x587   :  { %v1607_v35 = vpop.eup %1606 }
 0x588   :  { %v1213_v30 = vmul.f32 %v1607_v35, %v1201_v19 }
 0x58a   :  { %v1220_v32 = vmul.f32 %v1427_v37, %v1213_v30 }
 0x58c   :  { %v1227_v33 = vadd.f32 %v1428_v31, %v1220_v32 }
 0x58e   :  { %1608 = vtanh.f32 %v1227_v33 }
 0x598   :  { %v1609_v39 = vpop.eup %1608 }
 0x599   :  { %1229 = vst.msk [vmem:[#allocation15] sm:$0xff] %vm1192_vm3, %v1609_v39 }
 0x59a   :  { %1709 = shalt.err (!%p1706_p8)
}
 0x59b   :  { %s1710_s12 = scalar_lea.hbm %s2153_s16, 128 }
 0x59c   :  { %p1711_p9 = scmp.ne.s32.totalorder %s2153_s16, %s1710_s12  ;;  %p1714_p10 = scmp.lt.u32.totalorder %s1710_s12, %s2153_s16 }
 0x59e   :  { %p1716_p11 = pnand %p1714_p10, %p1711_p9 }
 0x5a0   :  { %1719 = shalt.err (!%p1716_p11)
}
 0x5a1   :  { %1269 = dma.vmem_to_hbm [thread:$0]  %s1267_s23, 128, %s2153_s16, [#allocation16]  }
 0x5a2   :  { %1728 = dma.done.wait [#allocation11], 512  }
 0x5a3   :  { %1729 = vsyncadd [#allocation11], 4294966784 }
 0x5a4   :  { %1730 = dma.done.wait [#allocation13], 384  }
 0x5a5   :  { %1731 = vsyncadd [#allocation13], 4294966912 }
 0x5a6   :  { %1732 = dma.done.wait [#allocation16], 128  }
 0x5a7   :  { %1733 = vsyncadd [#allocation16], 4294967168 }
 0x5a8   :  { %1282 = vsyncpa [#allocation11], 1 }
 0x5a9   :  { %1283 = vsyncpa [#allocation13], 1 }
 0x5aa   :  { %1284 = vsyncpa [#allocation16], 1 }
 0x5ab   :  { %1285 = vsyncmov [#allocation9] }
 0x5ae   :  { %s1286_s14 = vpop.sfrf %1285 }
 0x5af   :  { %p1429_p12 = scmp.ne.s32.totalorder %s1286_s14, 0 }
 0x5b1   :  { %1290 = shalt.err (%p1429_p12)  }
 0x5b2   :  { %1292 = vsyncmov [#allocation9 + $0x1] }
 0x5b5   :  { %s1293_s30 = vpop.sfrf %1292 }
 0x5b6   :  { %p1430_p13 = scmp.ne.s32.totalorder %s1293_s30, 0 }
 0x5b8   :  { %1297 = shalt.err (%p1430_p13)  }
 0x5b9   :  { %1299 = vsyncmov [#allocation9 + $0x2] }
 0x5bc   :  { %s1300_s0 = vpop.sfrf %1299 }
 0x5bd   :  { %p1431_p0 = scmp.ne.s32.totalorder %s1300_s0, 0 }
 0x5bf   :  { %1304 = shalt.err (%p1431_p0)  }
 0x5c0   :  { %1306 = vsyncmov [#allocation9 + $0x3] }
 0x5c3   :  { %s1307_s16 = vpop.sfrf %1306 }
 0x5c4   :  { %p1432_p1 = scmp.ne.s32.totalorder %s1307_s16, 0 }
 0x5c6   :  { %1311 = shalt.err (%p1432_p1)  }
 0x5c7   :  { %1313 = vsyncmov [#allocation9 + $0x4] }
 0x5ca   :  { %s1314_s3 = vpop.sfrf %1313 }
 0x5cb   :  { %p1433_p2 = scmp.ne.s32.totalorder %s1314_s3, 0 }
 0x5cd   :  { %1318 = shalt.err (%p1433_p2)  }
 0x5ce   :  { %1320 = vsyncmov [#allocation9 + $0x5] }
 0x5d1   :  { %s1321_s9 = vpop.sfrf %1320 }
 0x5d2   :  { %p1434_p3 = scmp.ne.s32.totalorder %s1321_s9, 0 }
 0x5d4   :  { %1325 = shalt.err (%p1434_p3)  }
 0x5d5   :  { %1327 = vsyncmov [#allocation9 + $0x6] }
 0x5d8   :  { %s1328_s10 = vpop.sfrf %1327 }
 0x5d9   :  { %p1435_p4 = scmp.ne.s32.totalorder %s1328_s10, 0 }
 0x5db   :  { %1332 = shalt.err (%p1435_p4)  }
 0x5dc   :  { %1334 = vsyncmov [#allocation9 + $0x7] }
 0x5df   :  { %s1335_s17 = vpop.sfrf %1334 }
 0x5e0   :  { %p1436_p5 = scmp.ne.s32.totalorder %s1335_s17, 0 }
 0x5e2   :  { %1339 = shalt.err (%p1436_p5)  }

</bundles_post_ra>
